<compile_context>
chip_gen: v7x
topology: tpu7x:2x2x1
jax: 0.10.0
libtpu: 0.0.40
codegen_flags: <defaults>
</compile_context>

<pallas_src>
import functools
import math

import jax
import jax.numpy as jnp
from jax.experimental import pallas as pl
from jax.experimental.pallas import tpu as pltpu


def _simclr_tile_kernel(lhs_ref, rhs_ref, logits_ref, row_loss_ref,
                        denom_acc, pos_acc, *, batch, inv_pos_count, shift,
                        row_tile, col_tile, lanes, rhs_resident):
    """One (row_tile x col_tile) block of the NxN similarity surface.

    lhs_ref: (row_tile, D) block of xn / temperature        (row-tile i)
    rhs_ref: resident (N, D) xn, or streamed (col_tile, D) block (col-tile j)
    logits_ref: (row_tile, col_tile) output tile
    row_loss_ref: (row_tile, 1) per-row loss, resident across the column axis
    denom_acc / pos_acc: (row_tile, lanes) f32 lane-aligned VMEM accumulators
    """
    i = pl.program_id(0)          # row-tile index ("parallel")
    j = pl.program_id(1)          # col-tile index ("arbitrary" reduction axis)

    @pl.when(j == 0)
    def _init():
        denom_acc[...] = jnp.zeros_like(denom_acc)
        pos_acc[...] = jnp.zeros_like(pos_acc)

    if rhs_resident:
        # Whole xn lives in VMEM (constant index map => one DMA); slice the
        # current column tile.  Start is aligned to col_tile (multiple of 8/128).
        c_start = pl.multiple_of(j * col_tile, col_tile)
        rhs = rhs_ref[pl.ds(c_start, col_tile), :]
    else:
        rhs = rhs_ref[...]

    # logits tile = (xn / T) @ xn.T for this block.  Contract the last axis of
    # both operands so the MXU is fed without a relayout/transpose of rhs.
    logits = jax.lax.dot_general(
        lhs_ref[...], rhs,
        dimension_numbers=(((1,), (1,)), ((), ())),
        preferred_element_type=jnp.float32)
    logits_ref[...] = logits.astype(logits_ref.dtype)

    # shift == 1/temperature is an analytic upper bound on logits for unit
    # vectors, so the exp argument is <= ~0 and never overflows.
    e = jnp.exp(logits - shift)

    r0 = i * row_tile
    c0 = j * col_tile
    groups = col_tile // lanes

    def _lane_partial(x):
        # (row_tile, col_tile) -> (row_tile, lanes): lane-aligned VPU adds only;
        # the cross-lane (XLU) reduce is deferred to the finalize.
        return jnp.sum(x.reshape(row_tile, groups, lanes), axis=1)

    def _touches(d):
        # Does this tile contain any element with (c - r) == d ?
        return jnp.logical_and(r0 + d < c0 + col_tile, c0 < r0 + row_tile + d)

    touches_main = _touches(0)
    touches_pos = jnp.logical_or(_touches(batch), _touches(-batch))

    # Denominator: sum over all off-diagonal columns of exp(logits).  Only tiles
    # that can touch the main diagonal pay for the iota + mask.
    @pl.when(touches_main)
    def _acc_masked():
        r = jax.lax.broadcasted_iota(jnp.int32, (row_tile, col_tile), 0) + r0
        c = jax.lax.broadcasted_iota(jnp.int32, (row_tile, col_tile), 1) + c0
        denom_acc[...] += _lane_partial(jnp.where(r == c, 0.0, e))

    @pl.when(jnp.logical_not(touches_main))
    def _acc_plain():
        denom_acc[...] += _lane_partial(e)

    # Positive-pair logits: num_views == 2, so positives are exactly
    # |r - c| == batch.  Only the tiles that can touch the +-batch diagonals
    # do any of this work.
    @pl.when(touches_pos)
    def _acc_pos():
        r = jax.lax.broadcasted_iota(jnp.int32, (row_tile, col_tile), 0) + r0
        c = jax.lax.broadcasted_iota(jnp.int32, (row_tile, col_tile), 1) + c0
        is_pos = jnp.abs(r - c) == batch
        pos_acc[...] += _lane_partial(jnp.where(is_pos, logits, 0.0))

    @pl.when(j == pl.num_programs(1) - 1)
    def _finalize():
        denom = jnp.sum(denom_acc[...], axis=1, keepdims=True)      # one XLU reduce
        pos_sum = jnp.sum(pos_acc[...], axis=1, keepdims=True)
        # per-row loss = log(denominator) - mean(positive logits)
        row_loss_ref[...] = (shift + jnp.log(denom)) - pos_sum * inv_pos_count


def _pick_row_tile(n):
    """Largest divisor tile such that the 'parallel' axis has >=2 (prefer even) tiles."""
    cands = [t for t in (512, 256, 128, 64, 32, 16, 8) if n % t == 0]
    for t in cands:
        if (n // t) >= 2 and (n // t) % 2 == 0:
            return t
    for t in cands:
        if (n // t) >= 2:
            return t
    if cands:
        return cands[0]
    return n


def _pick_col_tile(n):
    for t in (2048, 1024, 512, 256, 128):
        if n % t == 0:
            return t
    return n  # fall back to the full dimension (always legal for BlockSpec)


def simclr_loss(features, temperature: float = 0.07, row_tile=None, col_tile=None,
                logits_dtype=jnp.float32, operand_dtype=jnp.float32):
    """features: (B, V, D) float32 with V == 2.

    Returns (loss scalar, logits (N, N), pos_mask (N, N) f32), matching the
    PyTorch SimCLRLoss.forward with distributed=False, local_rank=0.
    """
    B, V, D = features.shape
    if V != 2:
        raise ValueError("SimCLRLoss.create_masks assumes num_views == 2")
    N = B * V

    # torch.cat(torch.unbind(features, dim=1), dim=0): view-0 rows then view-1 rows.
    feats = jnp.transpose(features, (1, 0, 2)).reshape(N, D).astype(jnp.float32)

    # F.normalize(dim=-1) via rsqrt (hoisted out of the N^2 hot loop); fold the
    # 1/temperature scale into the LHS operand only.
    sumsq = jnp.sum(feats * feats, axis=-1, keepdims=True)
    xn = feats * jax.lax.rsqrt(jnp.maximum(sumsq, 1e-24))
    inv_t = 1.0 / float(temperature)

    # Zero-pad D to a lane-dense multiple of 128 (exact: padded columns are zero
    # after normalization, so they contribute 0 to every dot product).
    D_pad = max(128, ((D + 127) // 128) * 128)
    if D_pad != D:
        xn = jnp.pad(xn, ((0, 0), (0, D_pad - D)))

    lhs = (xn * inv_t).astype(operand_dtype)
    rhs = xn.astype(operand_dtype)

    if row_tile is None:
        row_tile = _pick_row_tile(N)
    if col_tile is None:
        col_tile = _pick_col_tile(N)
    assert N % row_tile == 0 and N % col_tile == 0
    grid = (N // row_tile, N // col_tile)
    lanes = math.gcd(col_tile, 128)

    # --- explicit VMEM budget (resident rhs + double-buffered tiles + scratch) ---
    op_isize = jnp.dtype(operand_dtype).itemsize
    out_isize = jnp.dtype(logits_dtype).itemsize
    try:
        vmem_cap = int(pltpu.get_tpu_info().vmem_capacity_bytes)
    except Exception:
        vmem_cap = 64 * 1024 * 1024                      # v7x-safe fallback
    usable = int(vmem_cap * 0.75)

    lhs_bytes = 2 * row_tile * D_pad * op_isize          # double-buffered lhs tile
    out_bytes = 2 * row_tile * col_tile * out_isize      # double-buffered logits tile
    loss_bytes = 2 * row_tile * 128 * 4                  # (row_tile,1) lane-padded
    scratch_bytes = 2 * row_tile * max(lanes, 128) * 4   # two accumulators
    rhs_resident_bytes = N * D_pad * op_isize
    rhs_stream_bytes = 2 * col_tile * D_pad * op_isize
    base = lhs_bytes + out_bytes + loss_bytes + scratch_bytes

    rhs_resident = (base + rhs_resident_bytes) <= usable
    if rhs_resident:
        rhs_spec = pl.BlockSpec((N, D_pad), lambda i, j: (0, 0))   # single DMA
        rhs_bytes = rhs_resident_bytes
    else:
        rhs_spec = pl.BlockSpec((col_tile, D_pad), lambda i, j: (j, 0))
        rhs_bytes = rhs_stream_bytes
    vmem_limit = int(min(0.9 * vmem_cap,
                         max(32 << 20, base + rhs_bytes + (16 << 20))))

    kernel = functools.partial(
        _simclr_tile_kernel,
        batch=B, inv_pos_count=1.0 / float(V - 1), shift=inv_t,
        row_tile=row_tile, col_tile=col_tile, lanes=lanes,
        rhs_resident=rhs_resident)

    logits, row_loss = pl.pallas_call(
        kernel,
        out_shape=(
            jax.ShapeDtypeStruct((N, N), logits_dtype),
            jax.ShapeDtypeStruct((N, 1), jnp.float32),
        ),
        grid_spec=pltpu.PrefetchScalarGridSpec(
            num_scalar_prefetch=0,
            grid=grid,
            in_specs=[
                pl.BlockSpec((row_tile, D_pad), lambda i, j: (i, 0)),
                rhs_spec,
            ],
            out_specs=(
                pl.BlockSpec((row_tile, col_tile), lambda i, j: (i, j)),
                pl.BlockSpec((row_tile, 1), lambda i, j: (i, 0)),
            ),
            scratch_shapes=[
                pltpu.VMEM((row_tile, lanes), jnp.float32),   # denom accumulator
                pltpu.VMEM((row_tile, lanes), jnp.float32),   # positive-logit accumulator
            ],
        ),
        compiler_params=pltpu.CompilerParams(
            dimension_semantics=("parallel", "arbitrary"),
            vmem_limit_bytes=vmem_limit),
    )(lhs, rhs)

    loss = jnp.mean(row_loss)

    # pos_mask is pure index math; build it outside the kernel instead of paying
    # N^2 f32 of VMEM + HBM writeback for it.
    idx = jnp.arange(N)
    same_sample = (idx[:, None] % B) == (idx[None, :] % B)
    off_diag = idx[:, None] != idx[None, :]
    pos_mask = (same_sample & off_diag).astype(jnp.float32)

    return loss, logits, pos_mask


def _simclr_loss_ref(features, temperature: float = 0.07):
    """Pure-JAX reference mirroring the PyTorch forward (distributed=False, rank 0)."""
    B, V, D = features.shape
    N = B * V
    x = jnp.transpose(features, (1, 0, 2)).reshape(N, D)
    x = x / jnp.maximum(jnp.linalg.norm(x, axis=-1, keepdims=True), 1e-12)
    logits = (x @ x.T) / temperature
    eye_b = jnp.eye(B)
    local_mask = jnp.tile(eye_b, (V, V))
    pos_mask = local_mask - jnp.eye(N)
    neg_mask = jnp.ones_like(local_mask) - local_mask
    numerator = logits * pos_mask
    denom = jnp.sum(jnp.exp(logits) * jnp.logical_or(pos_mask, neg_mask),
                    axis=1, keepdims=True)
    log_prob = numerator - jnp.log(denom)
    mean_log_prob = log_prob * pos_mask / jnp.sum(pos_mask, axis=1, keepdims=True)
    loss = jnp.mean(jnp.sum(-mean_log_prob, axis=1))
    return loss, logits, pos_mask


if __name__ == "__main__":
    key = jax.random.PRNGKey(0)
    # Small but tiling-representative shapes: N = 256 rows.
    B, V, D = 128, 2, 64
    features = jax.random.normal(key, (B, V, D), dtype=jnp.float32)

    loss_r, logits_r, pos_r = _simclr_loss_ref(features, temperature=0.07)

    # (1) Explicit 128x128 tiles -> 2x2 grid: exercises the column reduction,
    #     the scalar-gated diag/pos branches, and the per-row finalize.
    loss, logits, pos_mask = simclr_loss(features, temperature=0.07,
                                         row_tile=128, col_tile=128)
    jax.block_until_ready((loss, logits, pos_mask))
    assert jnp.allclose(loss, loss_r, atol=1e-3, rtol=1e-3), (loss, loss_r)
    assert jnp.allclose(logits, logits_r, atol=2e-3, rtol=2e-3)
    assert jnp.allclose(pos_mask, pos_r)

    # (2) Default (large) tiles + bf16 logits writeback; loss path stays f32.
    loss2, logits2, _ = simclr_loss(features, temperature=0.07,
                                    logits_dtype=jnp.bfloat16)
    jax.block_until_ready((loss2, logits2))
    assert jnp.allclose(loss2, loss_r, atol=1e-3, rtol=1e-3), (loss2, loss_r)
    assert jnp.allclose(logits2.astype(jnp.float32), logits_r, atol=0.15, rtol=0.02)

    print("KERNEL_OK")
</pallas_src>

<mosaic_0001>
module attributes {stable_mosaic.version = 11 : i64} {
  func.func @_simclr_tile_kernel(%arg0: i32, %arg1: i32, %arg2: memref<128x128xf32, #tpu.memory_space<vmem>>, %arg3: memref<256x128xf32, #tpu.memory_space<vmem>>, %arg4: memref<128x128xf32, #tpu.memory_space<vmem>>, %arg5: memref<128x1xf32, #tpu.memory_space<vmem>>, %arg6: memref<128x128xf32, #tpu.memory_space<vmem>>, %arg7: memref<128x128xf32, #tpu.memory_space<vmem>>) attributes {dimension_semantics = [#tpu.dimension_semantics<parallel>, #tpu.dimension_semantics<arbitrary>], iteration_bounds = array<i64: 2, 2>, scalar_prefetch = 0 : i64, scratch_operands = 2 : i64, tpu.core_type = #tpu.core_type<tc>, window_params = [{transform_indices = @transform_0, window_bounds = array<i64: 128, 128>}, {pipeline_mode = #tpu.pipeline_mode<synchronous>, transform_indices = @transform_1, window_bounds = array<i64: 256, 128>}, {transform_indices = @transform_2, window_bounds = array<i64: 128, 128>}, {transform_indices = @transform_3, window_bounds = array<i64: 128, 1>}]} {
    %c0_i32 = arith.constant 0 : i32
    %0 = arith.cmpi eq, %arg1, %c0_i32 : i32
    %1 = arith.extui %0 : i1 to i32
    %c0_i32_0 = arith.constant 0 : i32
    %2 = arith.cmpi ne, %1, %c0_i32_0 : i32
    scf.if %2 {
      %cst_23 = arith.constant 0.000000e+00 : f32
      %47 = vector.broadcast %cst_23 : f32 to vector<128x128xf32>
      %c0_24 = arith.constant 0 : index
      %c0_25 = arith.constant 0 : index
      %48 = vector.load %arg6[%c0_24, %c0_25] : memref<128x128xf32, #tpu.memory_space<vmem>>, vector<128x128xf32>
      tpu.vector_store %arg6[%c0_24, %c0_25], %47 {strides = array<i32>} : memref<128x128xf32, #tpu.memory_space<vmem>>, vector<128x128xf32>,
      %cst_26 = arith.constant 0.000000e+00 : f32
      %49 = vector.broadcast %cst_26 : f32 to vector<128x128xf32>
      %c0_27 = arith.constant 0 : index
      %c0_28 = arith.constant 0 : index
      %50 = vector.load %arg7[%c0_27, %c0_28] : memref<128x128xf32, #tpu.memory_space<vmem>>, vector<128x128xf32>
      tpu.vector_store %arg7[%c0_27, %c0_28], %49 {strides = array<i32>} : memref<128x128xf32, #tpu.memory_space<vmem>>, vector<128x128xf32>,
    } else {
    }
    %c128_i32 = arith.constant 128 : i32
    %3 = arith.muli %arg1, %c128_i32 : i32
    %4 = tpu.assume_multiple %3, 128 : i32
    %5 = arith.index_cast %4 : i32 to index
    %c0 = arith.constant 0 : index
    %6 = vector.load %arg3[%5, %c0] : memref<256x128xf32, #tpu.memory_space<vmem>>, vector<128x128xf32>
    %c0_1 = arith.constant 0 : index
    %c0_2 = arith.constant 0 : index
    %7 = vector.load %arg2[%c0_1, %c0_2] : memref<128x128xf32, #tpu.memory_space<vmem>>, vector<128x128xf32>
    %cst = arith.constant dense<0.000000e+00> : vector<128x128xf32>
    %8 = tpu.matmul %7, %6, %cst {dimension_numbers = #tpu.dot_dimension_numbers<[1], [1], [0], [0], [0, 0, 1, 0], [], []>} : vector<128x128xf32>, vector<128x128xf32>, vector<128x128xf32> -> vector<128x128xf32>
    %c0_3 = arith.constant 0 : index
    %c0_4 = arith.constant 0 : index
    %9 = vector.load %arg4[%c0_3, %c0_4] : memref<128x128xf32, #tpu.memory_space<vmem>>, vector<128x128xf32>
    tpu.vector_store %arg4[%c0_3, %c0_4], %8 {strides = array<i32>} : memref<128x128xf32, #tpu.memory_space<vmem>>, vector<128x128xf32>,
    %cst_5 = arith.constant 14.2857141 : f32
    %10 = vector.broadcast %cst_5 : f32 to vector<128x128xf32>
    %11 = arith.subf %8, %10 : vector<128x128xf32>
    %12 = math.exp %11 : vector<128x128xf32>
    %c128_i32_6 = arith.constant 128 : i32
    %13 = arith.muli %arg0, %c128_i32_6 : i32
    %c128_i32_7 = arith.constant 128 : i32
    %14 = arith.muli %arg1, %c128_i32_7 : i32
    %c0_i32_8 = arith.constant 0 : i32
    %15 = arith.addi %13, %c0_i32_8 : i32
    %c128_i32_9 = arith.constant 128 : i32
    %16 = arith.addi %14, %c128_i32_9 : i32
    %17 = arith.cmpi slt, %15, %16 : i32
    %c128_i32_10 = arith.constant 128 : i32
    %18 = arith.addi %13, %c128_i32_10 : i32
    %c0_i32_11 = arith.constant 0 : i32
    %19 = arith.addi %18, %c0_i32_11 : i32
    %20 = arith.cmpi slt, %14, %19 : i32
    %21 = arith.andi %17, %20 : i1
    %c128_i32_12 = arith.constant 128 : i32
    %22 = arith.addi %13, %c128_i32_12 : i32
    %c128_i32_13 = arith.constant 128 : i32
    %23 = arith.addi %14, %c128_i32_13 : i32
    %24 = arith.cmpi slt, %22, %23 : i32
    %c128_i32_14 = arith.constant 128 : i32
    %25 = arith.addi %13, %c128_i32_14 : i32
    %c128_i32_15 = arith.constant 128 : i32
    %26 = arith.addi %25, %c128_i32_15 : i32
    %27 = arith.cmpi slt, %14, %26 : i32
    %28 = arith.andi %24, %27 : i1
    %c-128_i32 = arith.constant -128 : i32
    %29 = arith.addi %13, %c-128_i32 : i32
    %c128_i32_16 = arith.constant 128 : i32
    %30 = arith.addi %14, %c128_i32_16 : i32
    %31 = arith.cmpi slt, %29, %30 : i32
    %c128_i32_17 = arith.constant 128 : i32
    %32 = arith.addi %13, %c128_i32_17 : i32
    %c-128_i32_18 = arith.constant -128 : i32
    %33 = arith.addi %32, %c-128_i32_18 : i32
    %34 = arith.cmpi slt, %14, %33 : i32
    %35 = arith.andi %31, %34 : i1
    %36 = arith.ori %28, %35 : i1
    %37 = arith.extui %21 : i1 to i32
    %c0_i32_19 = arith.constant 0 : i32
    %38 = arith.cmpi ne, %37, %c0_i32_19 : i32
    scf.if %38 {
      %47 = tpu.iota {dimensions = array<i32: 0>} : vector<128x128xi32>
      %48 = vector.broadcast %13 : i32 to vector<128x128xi32>
      %49 = arith.addi %47, %48 : vector<128x128xi32>
      %50 = tpu.iota {dimensions = array<i32: 1>} : vector<128x128xi32>
      %51 = vector.broadcast %14 : i32 to vector<128x128xi32>
      %52 = arith.addi %50, %51 : vector<128x128xi32>
      %c0_23 = arith.constant 0 : index
      %c0_24 = arith.constant 0 : index
      %53 = vector.load %arg6[%c0_23, %c0_24] : memref<128x128xf32, #tpu.memory_space<vmem>>, vector<128x128xf32>
      %54 = arith.cmpi eq, %49, %52 : vector<128x128xi32>
      %cst_25 = arith.constant 0.000000e+00 : f32
      %55 = vector.broadcast %cst_25 : f32 to vector<128x128xf32>
      %56 = arith.select %54, %55, %12 : vector<128x128xi1>, vector<128x128xf32>
      %57 = vector.shape_cast %56 : vector<128x128xf32> to vector<128x1x128xf32>
      %cst_26 = arith.constant dense<0.000000e+00> : vector<128x128xf32>
      %58 = vector.multi_reduction <add>, %57, %cst_26 [1] : vector<128x1x128xf32> to vector<128x128xf32>
      %59 = arith.addf %53, %58 : vector<128x128xf32>
      %c0_27 = arith.constant 0 : index
      %c0_28 = arith.constant 0 : index
      %60 = vector.load %arg6[%c0_27, %c0_28] : memref<128x128xf32, #tpu.memory_space<vmem>>, vector<128x128xf32>
      tpu.vector_store %arg6[%c0_27, %c0_28], %59 {strides = array<i32>} : memref<128x128xf32, #tpu.memory_space<vmem>>, vector<128x128xf32>,
    } else {
    }
    %true = arith.constant true
    %39 = arith.xori %21, %true : i1
    %40 = arith.extui %39 : i1 to i32
    %c0_i32_20 = arith.constant 0 : i32
    %41 = arith.cmpi ne, %40, %c0_i32_20 : i32
    scf.if %41 {
      %c0_23 = arith.constant 0 : index
      %c0_24 = arith.constant 0 : index
      %47 = vector.load %arg6[%c0_23, %c0_24] : memref<128x128xf32, #tpu.memory_space<vmem>>, vector<128x128xf32>
      %48 = vector.shape_cast %12 : vector<128x128xf32> to vector<128x1x128xf32>
      %cst_25 = arith.constant dense<0.000000e+00> : vector<128x128xf32>
      %49 = vector.multi_reduction <add>, %48, %cst_25 [1] : vector<128x1x128xf32> to vector<128x128xf32>
      %50 = arith.addf %47, %49 : vector<128x128xf32>
      %c0_26 = arith.constant 0 : index
      %c0_27 = arith.constant 0 : index
      %51 = vector.load %arg6[%c0_26, %c0_27] : memref<128x128xf32, #tpu.memory_space<vmem>>, vector<128x128xf32>
      tpu.vector_store %arg6[%c0_26, %c0_27], %50 {strides = array<i32>} : memref<128x128xf32, #tpu.memory_space<vmem>>, vector<128x128xf32>,
    } else {
    }
    %42 = arith.extui %36 : i1 to i32
    %c0_i32_21 = arith.constant 0 : i32
    %43 = arith.cmpi ne, %42, %c0_i32_21 : i32
    scf.if %43 {
      %47 = tpu.iota {dimensions = array<i32: 0>} : vector<128x128xi32>
      %48 = vector.broadcast %13 : i32 to vector<128x128xi32>
      %49 = arith.addi %47, %48 : vector<128x128xi32>
      %50 = tpu.iota {dimensions = array<i32: 1>} : vector<128x128xi32>
      %51 = vector.broadcast %14 : i32 to vector<128x128xi32>
      %52 = arith.addi %50, %51 : vector<128x128xi32>
      %53 = arith.subi %49, %52 : vector<128x128xi32>
      %54 = math.absi %53 : vector<128x128xi32>
      %c128_i32_23 = arith.constant 128 : i32
      %55 = vector.broadcast %c128_i32_23 : i32 to vector<128x128xi32>
      %56 = arith.cmpi eq, %54, %55 : vector<128x128xi32>
      %c0_24 = arith.constant 0 : index
      %c0_25 = arith.constant 0 : index
      %57 = vector.load %arg7[%c0_24, %c0_25] : memref<128x128xf32, #tpu.memory_space<vmem>>, vector<128x128xf32>
      %cst_26 = arith.constant 0.000000e+00 : f32
      %58 = vector.broadcast %cst_26 : f32 to vector<128x128xf32>
      %59 = arith.select %56, %8, %58 : vector<128x128xi1>, vector<128x128xf32>
      %60 = vector.shape_cast %59 : vector<128x128xf32> to vector<128x1x128xf32>
      %cst_27 = arith.constant dense<0.000000e+00> : vector<128x128xf32>
      %61 = vector.multi_reduction <add>, %60, %cst_27 [1] : vector<128x1x128xf32> to vector<128x128xf32>
      %62 = arith.addf %57, %61 : vector<128x128xf32>
      %c0_28 = arith.constant 0 : index
      %c0_29 = arith.constant 0 : index
      %63 = vector.load %arg7[%c0_28, %c0_29] : memref<128x128xf32, #tpu.memory_space<vmem>>, vector<128x128xf32>
      tpu.vector_store %arg7[%c0_28, %c0_29], %62 {strides = array<i32>} : memref<128x128xf32, #tpu.memory_space<vmem>>, vector<128x128xf32>,
    } else {
    }
    %c1_i32 = arith.constant 1 : i32
    %44 = arith.cmpi eq, %arg1, %c1_i32 : i32
    %45 = arith.extui %44 : i1 to i32
    %c0_i32_22 = arith.constant 0 : i32
    %46 = arith.cmpi ne, %45, %c0_i32_22 : i32
    scf.if %46 {
      %c0_23 = arith.constant 0 : index
      %c0_24 = arith.constant 0 : index
      %47 = vector.load %arg6[%c0_23, %c0_24] : memref<128x128xf32, #tpu.memory_space<vmem>>, vector<128x128xf32>
      %cst_25 = arith.constant dense<0.000000e+00> : vector<128xf32>
      %48 = vector.multi_reduction <add>, %47, %cst_25 [1] : vector<128x128xf32> to vector<128xf32>
      %49 = vector.shape_cast %48 : vector<128xf32> to vector<128x1xf32>
      %c0_26 = arith.constant 0 : index
      %c0_27 = arith.constant 0 : index
      %50 = vector.load %arg7[%c0_26, %c0_27] : memref<128x128xf32, #tpu.memory_space<vmem>>, vector<128x128xf32>
      %cst_28 = arith.constant dense<0.000000e+00> : vector<128xf32>
      %51 = vector.multi_reduction <add>, %50, %cst_28 [1] : vector<128x128xf32> to vector<128xf32>
      %52 = vector.shape_cast %51 : vector<128xf32> to vector<128x1xf32>
      %53 = math.log %49 : vector<128x1xf32>
      %cst_29 = arith.constant 14.2857141 : f32
      %54 = vector.broadcast %cst_29 : f32 to vector<128x1xf32>
      %55 = arith.addf %54, %53 : vector<128x1xf32>
      %cst_30 = arith.constant 1.000000e+00 : f32
      %56 = vector.broadcast %cst_30 : f32 to vector<128x1xf32>
      %57 = arith.mulf %52, %56 : vector<128x1xf32>
      %58 = arith.subf %55, %57 : vector<128x1xf32>
      %c0_31 = arith.constant 0 : index
      %c0_32 = arith.constant 0 : index
      %59 = vector.load %arg5[%c0_31, %c0_32] : memref<128x1xf32, #tpu.memory_space<vmem>>, vector<128x1xf32>
      tpu.vector_store %arg5[%c0_31, %c0_32], %58 {strides = array<i32>} : memref<128x1xf32, #tpu.memory_space<vmem>>, vector<128x1xf32>,
    } else {
    }
    return
  }
  func.func @transform_0(%arg0: i32, %arg1: i32) -> (i32, i32) {
    %c0_i32 = arith.constant 0 : i32
    %c0_i32_0 = arith.constant 0 : i32
    return %arg0, %c0_i32 : i32, i32
  }
  func.func @transform_1(%arg0: i32, %arg1: i32) -> (i32, i32) {
    %c0_i32 = arith.constant 0 : i32
    %c0_i32_0 = arith.constant 0 : i32
    %c0_i32_1 = arith.constant 0 : i32
    return %c0_i32, %c0_i32_0 : i32, i32
  }
  func.func @transform_2(%arg0: i32, %arg1: i32) -> (i32, i32) {
    %c0_i32 = arith.constant 0 : i32
    return %arg0, %arg1 : i32, i32
  }
  func.func @transform_3(%arg0: i32, %arg1: i32) -> (i32, i32) {
    %c0_i32 = arith.constant 0 : i32
    %c0_i32_0 = arith.constant 0 : i32
    return %arg0, %c0_i32 : i32, i32
  }
}

</mosaic_0001>

<bundles_post_ra>
// kernel: tpu_custom_call.1
= control target key start
LH: loop header
LB: loop body
LE: loop exit
PB: predicated region body
PF: predicated region fallthrough
CT: control target
= control target key end

     0   :  { %s2517_s0 = inlined_call_operand.hbm [shape: f32[256,128], index: 0, kind: input, shape index: {}]   ;;  %s2518_s1 = inlined_call_operand.hbm [shape: f32[256,128], index: 1, kind: input, shape index: {}]   ;;  %s2519_s2 = inlined_call_operand.hbm [shape: f32[256,256], index: 2, kind: output, shape index: {0}]   ;;  %s2520_s3 = inlined_call_operand.vmem [shape: f32[256,1], index: 3, kind: output, shape index: {1}]  }
   0x1   :  { %2533 = sst [smem:[#allocation18_spill]] %s2518_s1 }
   0x2   :  { %9 = vsyncpa [#allocation5], 0 }
   0x3   :  { %11 = vsyncpa [#allocation5 + $0x1], 0 }
   0x4   :  { %12 = vsyncpa [#allocation8], 0 }
   0x5   :  { %13 = vsyncpa [#allocation6], 0 }
   0x6   :  { %15 = vsyncpa [#allocation6 + $0x1], 0  ;;  %s1856_s12 = smov 0   ;;  %s1858_s13 = smov 0  }
   0x7   :  { %s1860_s14 = smov 0   ;;  %s1862_s15 = smov 0  }
   0x8   :  { %s1864_s16 = smov 0   ;;  %s1866_s17 = smov 0  }
   0x9   :  { %s1868_s18 = smov 0   ;;  %s1870_s19 = smov 0  }
   0xa   :  { %s1872_s20 = smov 0   ;;  %s1874_s21 = smov 0  }
   0xb   :  { %s1876_s22 = smov 0  }
   0xc LB: > { %2534 = sst [smem:[#allocation13_spill]] %s1785_s12  ;;  %s1264_s23 = sadd.s32 4294967295, %s1825_s22   ;;  %s1825_s22 = sphi %s1876_s22, %s21_s22   ;;  %s1821_s21 = sphi %s1874_s21, %s2570_s21   ;;  %s1817_s20 = sphi %s1872_s20, %s2561_s20   ;;  %s1813_s19 = sphi %s1870_s19, %s2569_s19   ;;  %s1809_s18 = sphi %s1868_s18, %s2560_s18   ;;  %s1805_s17 = sphi %s1866_s17, %s2568_s17   ;;  %s1801_s16 = sphi %s1864_s16, %s2567_s16   ;;  %s1797_s15 = sphi %s1862_s15, %s2566_s15   ;;  %s1793_s14 = sphi %s1860_s14, %s2565_s14   ;;  %s1789_s13 = sphi %s1858_s13, %s2564_s13   ;;  %s1785_s12 = sphi %s1856_s12, %s2563_s12  }
   0xd   : > { %2535 = sst [smem:[#allocation14_spill]] %s1817_s20  ;;  %s1265_s24 = sadd.s32 4294967294, %s1825_s22  }
   0xe   : > { %p53_p0 = scmp.ne.s32.totalorder %s1801_s16, %s1797_s15  ;;  %p1912_p1 = scmp.eq.s32.totalorder %s1264_s23, 0 }
   0xf   : > { %s89_s26 = sadd.s32 1, %s1793_s14  ;;  %p99_p2 = scmp.ne.s32.totalorder %s1793_s14, %s1789_s13 }
  0x10   : > { %s2536_s25 = scalar_select %p1912_p1, 1, 0 }
  0x11   : > { %p1921_p3 = por %p1912_p1, %p53_p0  ;;  %p100_p4 = scmp.eq.s32.totalorder %s1264_s23, 3 }
  0x12   : > { %p105_p5 = scmp.ne.s32.totalorder %s1789_s13, %s1785_s12  ;;  %p106_p6 = scmp.eq.s32.totalorder %s1265_s24, 3 }
  0x13   : > { %s2537_s27 = scalar_select %p1921_p3, 1, 0 }
  0x14   : > { %p1927_p7 = por %p100_p4, %p99_p2  ;;  %p1266_p8 = scmp.ge.s32.totalorder %s1825_s22, 1 }
  0x15   : > { %p1932_p9 = por %p106_p6, %p105_p5  ;;  %p139_p10 = scmp.lt.s32.totalorder %s1825_s22, 5 }
  0x16   : > { %s2538_s28 = scalar_select %p1927_p7, 1, 0 }
  0x17   : > { %s2539_s29 = scalar_select %p1932_p9, 1, 0 }
  0x18   : > { %p1937_p11 = pnand %p1266_p8, %p139_p10  ;;  %s1827_s4 = smov [#allocation7]  }
  0x19   : > { %2540 = sst [smem:[#allocation15_spill]] %s2539_s29  ;;  %s151_s5 = sshll.u32 %s1827_s4, 4  ;;  %s152_s5 = int_to_ptr.vmem [resolvable:$true] %s151_s5 }
  0x1a   : > { %s2541_s30 = scalar_select %p1937_p11, 1, 0 }
  0x1b   : > { %p1466_p12 = pneg %p1937_p11  ;;  %s2543_s1 = sld [smem:[#allocation18_spill]] }
  0x1d   : > { %p1945_p13 = pnand %p1466_p12, %p1912_p1 }
  0x1f   : > { %p1643_p2 = pneg %p1945_p13 }
  0x21   : > { %s1641_s9 = scalar_lea.hbm %s2543_s1, 4096 }
  0x22   : > { %p1642_p0 = scmp.ne.s32.totalorder %s2543_s1, %s1641_s9  ;;  %p1648_p6 = scmp.lt.u32.totalorder %s1641_s9, %s2543_s1 }
  0x24   : > { %p1644_p4 = pnand %p1643_p2, %p1642_p0 }
  0x26   : > { %p1645_p5 = pneg %p1644_p4 }
  0x28   : > { %p1650_p8 = pnand %p1648_p6, %p1645_p5 }
  0x2a   : > { %1653 = shalt.err (!%p1650_p8)
}
  0x2b   : > { %s1654_s24 = scalar_lea.vmem %s152_s5, 4096  ;;  %p1662_p7 = scmp.lt.s32.totalorder %s152_s5, %s152_s5 }
  0x2c   : > { %p1655_p10 = scmp.ne.s32.totalorder %s152_s5, %s1654_s24  ;;  %p1663_p1 = scmp.lt.s32.totalorder %s1654_s24, %s1654_s24 }
  0x2e   : > { %p1657_p12 = pnand %p1655_p10, %p1643_p2  ;;  %p1664_p3 = por %p1663_p1, %p1662_p7 }
  0x30   : > { %p1658_p9 = pneg %p1657_p12 }
  0x32   : > { %p1665_p11 = pnand %p1664_p3, %p1658_p9 }
  0x34   : > { %1668 = shalt.err (!%p1665_p11)
}
  0x35   : > { %s2526_s4 = smov 128   ;;  %s2527_s7 = smov 8  }
  0x36   : > { %1469 = dma.hbm_to_vmem [thread:$0]  (!%p1945_p13), %s2543_s1, 4096, %s152_s5, [#allocation8], %s2526_s4, %s2526_s4, %s2527_s7  }
  0x37   : > { %s30_s10 = sadd.s32 1, %s1817_s20  ;;  %s33_s11 = sadd.s32 1, %s1821_s21 }
  0x38   : > { %p31_p1 = scmp.ge.s32.totalorder %s30_s10, 2  ;;  %s40_s15 = sadd.s32 1, %s1805_s17 }
  0x39   : > { %p47_p3 = scmp.ne.s32.totalorder %s1805_s17, %s1801_s16  ;;  %p48_p7 = scmp.eq.s32.totalorder %s1825_s22, 0 }
  0x3a   : > { %s2572_s10 = smov (%p31_p1, %s30_s10), 0  ;;  %s2574_s11 = smov (!%p31_p1, %s33_s11), %s1821_s21 }
  0x3b   : > { %2544 = sst [smem:[#allocation16_spill]] %s2572_s10  ;;  %s85_s6 = ssub.s32 %s1817_s20, %s2572_s10 }
  0x3c   : > { %p35_p9 = scmp.ge.s32.totalorder %s2574_s11, 2  ;;  %p1479_p11 = scmp.lt.s32.totalorder %s1825_s22, 4 }
  0x3d   : > { %p1980_p13 = por %p48_p7, %p47_p3  ;;  %s165_s23 = sand.u32 1, %s1805_s17  }
  0x3e   : > { %s2576_s11 = smov (%p35_p9, %s2574_s11), 0  ;;  %s1269_s24 = sshll.u32 %s165_s23, 7 }
  0x3f   : > { %2546 = sst [smem:[#allocation17_spill]] %s2576_s11  ;;  %s37_s8 = ssub.s32 %s1821_s21, %s2576_s11 }
  0x40   : > { %p38_p0 = scmp.eq.s32.totalorder %s37_s8, 0  ;;  %s86_s9 = sor.u32 %s85_s6, %s37_s8 }
  0x41   : > { %p87_p2 = scmp.eq.s32.totalorder %s86_s9, 0  ;;  %s1320_s4 = sshll.u32 %s1821_s21, 11 }
  0x42   : > { %s1991_s7 = scalar_select %p38_p0, %s1805_s17, %s40_s15  }
  0x43   : > { %s1996_s1 = scalar_select %p87_p2, %s1793_s14, %s89_s26  }
  0x44   : > { %s2001_s29 = scalar_lea.hbm %s2517_s0, %s1320_s4  ;;  %s169_s12 = scalar_lea.vmem [#allocation4], %s1269_s24 }
  0x45   : > { %s176_s11 = sshll.u32 %s169_s12, 4  ;;  %p2009_p4 = pnand %p1479_p11, %p1980_p13  ;;  %s2003_s11 = int_to_ptr.vmem [resolvable:$true] %s176_s11 }
  0x46   : > { %s2013_s26 = scalar_lea.sflag [#allocation5], %s165_s23  ;;  %s1669_s20 = scalar_lea.hbm %s2001_s29, 2048 }
  0x47   : > { %p1670_p5 = scmp.ne.s32.totalorder %s2001_s29, %s1669_s20  ;;  %p1671_p6 = pneg %p2009_p4 }
  0x48   : > { %s1674_s10 = scalar_lea.hbm %s2517_s0, 4096  ;;  %p1675_p12 = scmp.lt.u32.totalorder %s2001_s29, %s2517_s0 }
  0x49   : > { %p1672_p8 = pnand %p1671_p6, %p1670_p5  ;;  %p1676_p1 = scmp.lt.u32.totalorder %s1674_s10, %s1669_s20 }
  0x4a   : > { %p1678_p7 = scmp.lt.u32.totalorder %s1669_s20, %s2001_s29 }
  0x4b   : > { %p1673_p10 = pneg %p1672_p8  ;;  %p1677_p3 = por %p1676_p1, %p1675_p12 }
  0x4d   : > { %p1679_p9 = por %p1678_p7, %p1677_p3 }
  0x4f   : > { %p1680_p11 = pnand %p1679_p9, %p1673_p10 }
  0x51   : > { %1683 = shalt.err (!%p1680_p11)
}
  0x52   : > { %s1684_s23 = scalar_lea.vmem %s2003_s11, 2048  ;;  %s1830_s24 = smov [#allocation4]  }
  0x53   : > { %p1685_p13 = scmp.ne.s32.totalorder %s2003_s11, %s1684_s23  ;;  %s1689_s8 = sshll.u32 %s1830_s24, 4  ;;  %s1690_s8 = int_to_ptr.vmem [resolvable:$false] %s1689_s8 }
  0x54   : > { %s1691_s9 = scalar_lea.vmem %s1690_s8, 4096  ;;  %p1692_p5 = scmp.lt.s32.totalorder %s2003_s11, %s1690_s8 }
  0x55   : > { %p1687_p0 = pnand %p1685_p13, %p1671_p6  ;;  %p1693_p8 = scmp.lt.s32.totalorder %s1691_s9, %s1684_s23 }
  0x57   : > { %p1688_p2 = pneg %p1687_p0  ;;  %p1694_p12 = por %p1693_p8, %p1692_p5 }
  0x59   : > { %p1695_p1 = pnand %p1694_p12, %p1688_p2 }
  0x5b   : > { %1698 = shalt.err (!%p1695_p1)
}
  0x5c   : > { %s2548_s20 = smov 8   ;;  %s2549_s12 = smov 128  }
  0x5d   : > { %1473 = dma.hbm_to_vmem [thread:$0]  (!%p2009_p4), %s2001_s29, 2048, %s2003_s11, %s2013_s26, %s2549_s12, %s2549_s12, %s2548_s20  }
  0x5e   : > { %p2550_p6 = scmp.ne.s32.totalorder %s2541_s30, 0 }
  0x5f   : > { %s190_s4 = sand.u32 (!%p2550_p6), 1, %s1801_s16   ;;  %p2551_p10 = scmp.ne.s32.totalorder (!%p2550_p6), %s2537_s27, 0 }
  0x60   : > { %188 = sbr.rel (%p2550_p6) target bundleno = 741 (0x2e5), region = 28  ;;  %s1273_s10 = sshll.u32 (!%p2550_p6), %s190_s4, 7 }
  0x61   : > { %s191_s6 = scalar_lea.sflag (!%p2550_p6), [#allocation5], %s190_s4  ;;  %s2047_s5 = scalar_lea.vmem (!%p2550_p6), [#allocation4], %s1273_s10 }
  0x67   : > { %1772 = dma.done.wait (%p2551_p10), %s191_s6, 2048  }
  0x68   : > { %1774 = vsyncadd (%p2551_p10), %s191_s6, 4294965248  ;;  %p2552_p3 = scmp.ne.s32.totalorder %s2536_s25, 0 }
  0x6a   : > { %1776 = dma.done.wait (%p2552_p3), [#allocation8], 4096  }
  0x6b   : > { %1778 = vsyncadd (%p2552_p3), [#allocation8], 4294963200  ;;  %s216_s29 = sand.u32 1, %s1789_s13   ;;  %s1276_s30 = sshll.u32 %s1813_s19, 4 }
  0x6c   : > { %s1275_s11 = sshll.u32 %s216_s29, 7  ;;  %p229_p4 = scmp.lt.s32.totalorder %s1276_s30, 31 }
  0x6d   : > { %s2066_s24 = scalar_lea.vmem [#allocation9], %s1275_s11  ;;  %p1278_p7 = scmp.ne.s32.totalorder %s1809_s18, 0 }
  0x6e   : > { %s2578_s30 = smov (!%p229_p4, %s1276_s30), 31  ;;  %v1831_v0 = vmov (!%p1278_p7), 0.0  }
  0x6f   : > { %s1277_s15 = sshll.u32 %s2578_s30, 3  ;;  %237 = sbr.rel (%p1278_p7) target bundleno = 127 (0x7f), region = 40  ;;  %238 = vst [vmem:[#allocation2] sm:$0xff] (!%p1278_p7), %v1831_v0  ;;  %239 = vst [vmem:[#allocation2 + $0x8] sm:$0xff] (!%p1278_p7), %v1831_v0 }
  0x70   : > { %s2064_s27 = scalar_lea.vmem %s2520_s3, %s1277_s15  ;;  %240 = vst [vmem:[#allocation2 + $0x10] sm:$0xff] (!%p1278_p7), %v1831_v0  ;;  %241 = vst [vmem:[#allocation2 + $0x18] sm:$0xff] (!%p1278_p7), %v1831_v0 }
  0x71   : > { %242 = vst [vmem:[#allocation2 + $0x20] sm:$0xff] (!%p1278_p7), %v1831_v0  ;;  %243 = vst [vmem:[#allocation2 + $0x28] sm:$0xff] (!%p1278_p7), %v1831_v0 }
  0x72   : > { %244 = vst [vmem:[#allocation2 + $0x30] sm:$0xff] (!%p1278_p7), %v1831_v0  ;;  %245 = vst [vmem:[#allocation2 + $0x38] sm:$0xff] (!%p1278_p7), %v1831_v0 }
  0x73   : > { %246 = vst [vmem:[#allocation2 + $0x40] sm:$0xff] (!%p1278_p7), %v1831_v0  ;;  %247 = vst [vmem:[#allocation2 + $0x48] sm:$0xff] (!%p1278_p7), %v1831_v0 }
  0x74   : > { %248 = vst [vmem:[#allocation2 + $0x50] sm:$0xff] (!%p1278_p7), %v1831_v0  ;;  %249 = vst [vmem:[#allocation2 + $0x58] sm:$0xff] (!%p1278_p7), %v1831_v0 }
  0x75   : > { %250 = vst [vmem:[#allocation2 + $0x60] sm:$0xff] (!%p1278_p7), %v1831_v0  ;;  %251 = vst [vmem:[#allocation2 + $0x68] sm:$0xff] (!%p1278_p7), %v1831_v0 }
  0x76   : > { %252 = vst [vmem:[#allocation2 + $0x70] sm:$0xff] %v1831_v0  ;;  %253 = vst [vmem:[#allocation2 + $0x78] sm:$0xff] %v1831_v0 }
  0x77   : > { %254 = vst [vmem:[#allocation3] sm:$0xff] %v1831_v0  ;;  %255 = vst [vmem:[#allocation3 + $0x8] sm:$0xff] %v1831_v0 }
  0x78   : > { %256 = vst [vmem:[#allocation3 + $0x10] sm:$0xff] %v1831_v0  ;;  %257 = vst [vmem:[#allocation3 + $0x18] sm:$0xff] %v1831_v0 }
  0x79   : > { %258 = vst [vmem:[#allocation3 + $0x20] sm:$0xff] %v1831_v0  ;;  %259 = vst [vmem:[#allocation3 + $0x28] sm:$0xff] %v1831_v0 }
  0x7a   : > { %260 = vst [vmem:[#allocation3 + $0x30] sm:$0xff] %v1831_v0  ;;  %261 = vst [vmem:[#allocation3 + $0x38] sm:$0xff] %v1831_v0 }
  0x7b   : > { %262 = vst [vmem:[#allocation3 + $0x40] sm:$0xff] %v1831_v0  ;;  %263 = vst [vmem:[#allocation3 + $0x48] sm:$0xff] %v1831_v0 }
  0x7c   : > { %264 = vst [vmem:[#allocation3 + $0x50] sm:$0xff] %v1831_v0  ;;  %265 = vst [vmem:[#allocation3 + $0x58] sm:$0xff] %v1831_v0 }
  0x7d   : > { %266 = vst [vmem:[#allocation3 + $0x60] sm:$0xff] %v1831_v0  ;;  %267 = vst [vmem:[#allocation3 + $0x68] sm:$0xff] %v1831_v0 }
  0x7e   : > { %268 = vst [vmem:[#allocation3 + $0x70] sm:$0xff] %v1831_v0  ;;  %269 = vst [vmem:[#allocation3 + $0x78] sm:$0xff] %v1831_v0 }
  0x7f PF: > { %s2070_s25 = sshll.u32 %s1809_s18, 7  ;;  %s2073_s8 = sshll.u32 %s1813_s19, 7  ;;  %v288_v1 = vld [vmem:[%s2047_s5] sm:$0xff]  ;;  %v289_v27 = vld [vmem:[%s2047_s5 + $0x8] sm:$0xff]  ;;  %v290_v29 = vld [vmem:[%s2047_s5 + $0x10] sm:$0xff] }
  0x80   : > { %v296_v2 = vld [vmem:[%s2047_s5 + $0x40] sm:$0xff]  ;;  %s514_s9 = sadd.s32 128, %s2070_s25  ;;  %1386 = vmatprep.mubr.f32.mxu0 %v288_v1  ;;  %s2079_s20 = scalar_lea.vmem [#allocation7], %s2070_s25  ;;  %v297_v28 = vld [vmem:[%s2047_s5 + $0x48] sm:$0xff]  ;;  %v298_v30 = vld [vmem:[%s2047_s5 + $0x50] sm:$0xff] }
  0x81   : > { %1398 = vmatprep.mubr.f32.mxu1 %v296_v2  ;;  %v272_v3 = vld [vmem:[%s2079_s20] sm:$0xff]  ;;  %v273_v4 = vld [vmem:[%s2079_s20 + $0x8] sm:$0xff]  ;;  %p515_p9 = scmp.lt.s32.totalorder %s2073_s8, %s514_s9  ;;  %s516_s12 = sadd.s32 128, %s2073_s8  ;;  %v274_v5 = vld [vmem:[%s2079_s20 + $0x10] sm:$0xff] }
  0x82   : > { %v1410_v6 = vpack.c.bf16 %v273_v4, %v272_v3  ;;  %p517_p11 = scmp.lt.s32.totalorder %s2070_s25, %s516_s12  ;;  %p2087_p13 = scmp.lt.s32.totalorder %s516_s12, %s514_s9  ;;  %v275_v7 = vld [vmem:[%s2079_s20 + $0x18] sm:$0xff]  ;;  %v276_v9 = vld [vmem:[%s2079_s20 + $0x20] sm:$0xff]  ;;  %v277_v10 = vld [vmem:[%s2079_s20 + $0x28] sm:$0xff] }
  0x83   : > { %s521_s10 = sadd.s32 256, %s2073_s8  ;;  %s525_s6 = sadd.s32 4294967168, %s2073_s8  ;;  %v1414_v8 = vpack.c.bf16 %v275_v7, %v274_v5  ;;  %v1418_v11 = vpack.c.bf16 %v277_v10, %v276_v9  ;;  %v278_v12 = vld [vmem:[%s2079_s20 + $0x30] sm:$0xff]  ;;  %v279_v13 = vld [vmem:[%s2079_s20 + $0x38] sm:$0xff]  ;;  %v280_v15 = vld [vmem:[%s2079_s20 + $0x40] sm:$0xff] }
  0x84   : > { %1411 = vmatprep.subr.bf16.mxu0 %v1410_v6  ;;  %p2094_p0 = pnand %p517_p11, %p515_p9  ;;  %p522_p2 = scmp.lt.s32.totalorder %s2070_s25, %s521_s10  ;;  %1442 = vmatprep.subr.bf16.mxu1 %v1410_v6  ;;  %v1422_v14 = vpack.c.bf16 %v279_v13, %v278_v12  ;;  %v281_v16 = vld [vmem:[%s2079_s20 + $0x48] sm:$0xff]  ;;  %v282_v18 = vld [vmem:[%s2079_s20 + $0x50] sm:$0xff]  ;;  %v283_v19 = vld [vmem:[%s2079_s20 + $0x58] sm:$0xff] }
  0x85   : > { %p526_p5 = scmp.lt.s32.totalorder %s525_s6, %s514_s9  ;;  %p527_p8 = scmp.lt.s32.totalorder %s2070_s25, %s2073_s8  ;;  %1413 = vmatpush3.bf16.xpose.msra.mxu0 %v1410_v6  ;;  %1450 = vmatpush3.bf16.xpose.msra.mxu1 %v1410_v6  ;;  %v1426_v17 = vpack.c.bf16 %v281_v16, %v280_v15  ;;  %v1430_v20 = vpack.c.bf16 %v283_v19, %v282_v18  ;;  %v284_v21 = vld [vmem:[%s2079_s20 + $0x60] sm:$0xff]  ;;  %v285_v22 = vld [vmem:[%s2079_s20 + $0x68] sm:$0xff]  ;;  %v286_v24 = vld [vmem:[%s2079_s20 + $0x70] sm:$0xff] }
  0x86   : > { %p523_p12 = pnand %p522_p2, %p2087_p13  ;;  %1415 = vmatprep.subr.bf16.mxu0 %v1414_v8  ;;  %1443 = vmatprep.subr.bf16.mxu1 %v1414_v8  ;;  %v1434_v23 = vpack.c.bf16 %v285_v22, %v284_v21  ;;  %v287_v25 = vld [vmem:[%s2079_s20 + $0x78] sm:$0xff]  ;;  %v292_v33 = vld [vmem:[%s2047_s5 + $0x20] sm:$0xff]  ;;  %v293_v35 = vld [vmem:[%s2047_s5 + $0x28] sm:$0xff] }
  0x87   : > { %p528_p1 = pnand %p527_p8, %p526_p5  ;;  %v1438_v26 = vpack.c.bf16 %v287_v25, %v286_v24  ;;  %v291_v31 = vld [vmem:[%s2047_s5 + $0x18] sm:$0xff]  ;;  %v300_v34 = vld [vmem:[%s2047_s5 + $0x60] sm:$0xff]  ;;  %v301_v36 = vld [vmem:[%s2047_s5 + $0x68] sm:$0xff] }
  0x88   : > { %p524_p6 = pneg %p523_p12  ;;  %v299_v32 = vld [vmem:[%s2047_s5 + $0x58] sm:$0xff]  ;;  %v294_v37 = vld [vmem:[%s2047_s5 + $0x30] sm:$0xff] }
  0x89   : > { %p529_p10 = pneg %p528_p1  ;;  %v302_v38 = vld [vmem:[%s2047_s5 + $0x70] sm:$0xff]  ;;  %v295_v39 = vld [vmem:[%s2047_s5 + $0x38] sm:$0xff] }
  0x8a   : > { %v303_v40 = vld [vmem:[%s2047_s5 + $0x78] sm:$0xff] }
  0x8b   : > { %p2105_p3 = por %p529_p10, %p524_p6 }
  0x8d   : > { %1417 = vmatpush3.bf16.xpose.msra.mxu0 %v1414_v8  ;;  %1451 = vmatpush3.bf16.xpose.msra.mxu1 %v1414_v8 }
  0x8e   : > { %1419 = vmatprep.subr.bf16.mxu0 %v1418_v11  ;;  %1444 = vmatprep.subr.bf16.mxu1 %v1418_v11 }
  0x95   : > { %1421 = vmatpush3.bf16.xpose.msra.mxu0 %v1418_v11  ;;  %1452 = vmatpush3.bf16.xpose.msra.mxu1 %v1418_v11 }
  0x96   : > { %1423 = vmatprep.subr.bf16.mxu0 %v1422_v14  ;;  %1445 = vmatprep.subr.bf16.mxu1 %v1422_v14 }
  0x9d   : > { %1425 = vmatpush3.bf16.xpose.msra.mxu0 %v1422_v14  ;;  %1453 = vmatpush3.bf16.xpose.msra.mxu1 %v1422_v14 }
  0x9e   : > { %1427 = vmatprep.subr.bf16.mxu0 %v1426_v17  ;;  %1446 = vmatprep.subr.bf16.mxu1 %v1426_v17 }
  0xa5   : > { %1429 = vmatpush3.bf16.xpose.msra.mxu0 %v1426_v17  ;;  %1454 = vmatpush3.bf16.xpose.msra.mxu1 %v1426_v17 }
  0xa6   : > { %1431 = vmatprep.subr.bf16.mxu0 %v1430_v20  ;;  %1447 = vmatprep.subr.bf16.mxu1 %v1430_v20 }
  0xad   : > { %1433 = vmatpush3.bf16.xpose.msra.mxu0 %v1430_v20  ;;  %1455 = vmatpush3.bf16.xpose.msra.mxu1 %v1430_v20 }
  0xae   : > { %1435 = vmatprep.subr.bf16.mxu0 %v1434_v23  ;;  %1448 = vmatprep.subr.bf16.mxu1 %v1434_v23 }
  0xb5   : > { %1437 = vmatpush3.bf16.xpose.msra.mxu0 %v1434_v23  ;;  %1456 = vmatpush3.bf16.xpose.msra.mxu1 %v1434_v23 }
  0xb6   : > { %1439 = vmatprep.subr.bf16.mxu0 %v1438_v26  ;;  %1449 = vmatprep.subr.bf16.mxu1 %v1438_v26 }
  0xbd   : > { %1441 = vmatpush3.bf16.xpose.msra.mxu0 %v1438_v26  ;;  %1457 = vmatpush3.bf16.xpose.msra.mxu1 %v1438_v26 }
  0xc4   : > { %1387 = vmatmul.mubr.f32.vlgmr.msra.gmra.mrb[0].mxu0 %v289_v27  ;;  %1399 = vmatmul.mubr.f32.vlgmr.msra.gmra.mrb[0].mxu1 %v297_v28 }
  0xc5   : > { %1389 = vmatprep.mubr.f32.mxu0 %v290_v29  ;;  %1401 = vmatprep.mubr.f32.mxu1 %v298_v30 }
  0xc8   : > { %1390 = vmatmul.mubr.f32.gmra.mrb[2].mxu0 %v291_v31  ;;  %1402 = vmatmul.mubr.f32.gmra.mrb[2].mxu1 %v299_v32 }
  0xc9   : > { %1392 = vmatprep.mubr.f32.mxu0 %v292_v33  ;;  %1404 = vmatprep.mubr.f32.mxu1 %v300_v34 }
  0xcc   : > { %1393 = vmatmul.mubr.f32.gmra.mrb[4].mxu0 %v293_v35  ;;  %1405 = vmatmul.mubr.f32.gmra.mrb[4].mxu1 %v301_v36 }
  0xcd   : > { %1395 = vmatprep.mubr.f32.mxu0 %v294_v37  ;;  %1407 = vmatprep.mubr.f32.mxu1 %v302_v38 }
  0xd0   : > { %1396 = vmatmul.mubr.f32.gmra.mrb[6].mxu0 %v295_v39  ;;  %1408 = vmatmul.mubr.f32.gmra.mrb[6].mxu1 %v303_v40 }
 0x197   : > { %v2133_v41 = vpop.f32.mrb[0].mxu0  ;;  %v2135_v42 = vpop.f32.mrb[0].mxu1 }
 0x198   : > { %450 = vst [vmem:[%s2066_s24 + $0x8] sm:$0xff] %v2133_v41  ;;  %v1281_v43 = vadd.f32 -14.285714, %v2133_v41  ;;  %458 = vst [vmem:[%s2066_s24 + $0x48] sm:$0xff] %v2135_v42  ;;  %v1289_v44 = vadd.f32 -14.285714, %v2135_v42 }
 0x199   : > { %v2143_v45 = vpop.f32.mrb[1].mxu0  ;;  %v2145_v46 = vpop.f32.mrb[1].mxu1 }
 0x19a   : > { %449 = vst [vmem:[%s2066_s24] sm:$0xff] %v2143_v45  ;;  %v1280_v47 = vadd.f32 -14.285714, %v2143_v45  ;;  %457 = vst [vmem:[%s2066_s24 + $0x40] sm:$0xff] %v2145_v46  ;;  %v1288_v48 = vadd.f32 -14.285714, %v2145_v46 }
 0x19b   : > { %v483_v49 = vmul.f32 1.442695, %v1281_v43  ;;  %v499_v50 = vmul.f32 1.442695, %v1289_v44  ;;  %v2153_v53 = vpop.f32.mrb[2].mxu0  ;;  %v2155_v54 = vpop.f32.mrb[2].mxu1  ;;  %v533_v43 = vlaneseq (!%p2094_p0)  ;;  %v2248_v44 = vstv (!%p2094_p0), %s2073_s8 }
 0x19c   : > { %v481_v51 = vmul.f32 1.442695, %v1280_v47  ;;  %v497_v52 = vmul.f32 1.442695, %v1288_v48  ;;  %452 = vst [vmem:[%s2066_s24 + $0x18] sm:$0xff] %v2153_v53  ;;  %460 = vst [vmem:[%s2066_s24 + $0x58] sm:$0xff] %v2155_v54  ;;  %v569_v47 = vstv (!%p2094_p0), %s2070_s25 }
 0x19d   : > { %1577 = vpow2.f32 %v483_v49  ;;  %v1283_v55 = vadd.f32 -14.285714, %v2153_v53  ;;  %v1291_v56 = vadd.f32 -14.285714, %v2155_v54  ;;  %v2163_v57 = vpop.f32.mrb[3].mxu0  ;;  %v2165_v58 = vpop.f32.mrb[3].mxu1 }
 0x19e   : > { %1579 = vpow2.f32 %v499_v50  ;;  %451 = vst [vmem:[%s2066_s24 + $0x10] sm:$0xff] %v2163_v57  ;;  %v1282_v59 = vadd.f32 -14.285714, %v2163_v57  ;;  %459 = vst [vmem:[%s2066_s24 + $0x50] sm:$0xff] %v2165_v58  ;;  %v1290_v60 = vadd.f32 -14.285714, %v2165_v58 }
 0x19f   : > { %1581 = vpow2.f32 %v481_v51  ;;  %v487_v61 = vmul.f32 1.442695, %v1283_v55  ;;  %v503_v62 = vmul.f32 1.442695, %v1291_v56  ;;  %v2173_v1 = vpop.f32.mrb[4].mxu0  ;;  %v2175_v2 = vpop.f32.mrb[4].mxu1 }
 0x1a0   : > { %1583 = vpow2.f32 %v497_v52  ;;  %v485_v63 = vmul.f32 1.442695, %v1282_v59  ;;  %v501_v0 = vmul.f32 1.442695, %v1290_v60  ;;  %454 = vst [vmem:[%s2066_s24 + $0x28] sm:$0xff] %v2173_v1  ;;  %462 = vst [vmem:[%s2066_s24 + $0x68] sm:$0xff] %v2175_v2 }
 0x1a1   : > { %1585 = vpow2.f32 %v487_v61  ;;  %v1285_v3 = vadd.f32 -14.285714, %v2173_v1  ;;  %v1293_v4 = vadd.f32 -14.285714, %v2175_v2  ;;  %v2183_v5 = vpop.f32.mrb[5].mxu0  ;;  %v2185_v6 = vpop.f32.mrb[5].mxu1 }
 0x1a2   : > { %1587 = vpow2.f32 %v503_v62  ;;  %453 = vst [vmem:[%s2066_s24 + $0x20] sm:$0xff] %v2183_v5  ;;  %v1284_v7 = vadd.f32 -14.285714, %v2183_v5  ;;  %461 = vst [vmem:[%s2066_s24 + $0x60] sm:$0xff] %v2185_v6  ;;  %v1292_v8 = vadd.f32 -14.285714, %v2185_v6 }
 0x1a3   : > { %1589 = vpow2.f32 %v485_v63  ;;  %v491_v9 = vmul.f32 1.442695, %v1285_v3  ;;  %v507_v10 = vmul.f32 1.442695, %v1293_v4  ;;  %v2193_v13 = vpop.f32.mrb[6].mxu0  ;;  %v2195_v14 = vpop.f32.mrb[6].mxu1 }
 0x1a4   : > { %1591 = vpow2.f32 %v501_v0  ;;  %v489_v11 = vmul.f32 1.442695, %v1284_v7  ;;  %v505_v12 = vmul.f32 1.442695, %v1292_v8  ;;  %456 = vst [vmem:[%s2066_s24 + $0x38] sm:$0xff] %v2193_v13  ;;  %464 = vst [vmem:[%s2066_s24 + $0x78] sm:$0xff] %v2195_v14 }
 0x1a5   : > { %1593 = vpow2.f32 %v491_v9  ;;  %v1287_v15 = vadd.f32 -14.285714, %v2193_v13  ;;  %v1295_v16 = vadd.f32 -14.285714, %v2195_v14  ;;  %v2203_v17 = vpop.f32.mrb[7].mxu0  ;;  %v2205_v18 = vpop.f32.mrb[7].mxu1 }
 0x1a6   : > { %1595 = vpow2.f32 %v507_v10  ;;  %455 = vst [vmem:[%s2066_s24 + $0x30] sm:$0xff] %v2203_v17  ;;  %v1286_v19 = vadd.f32 -14.285714, %v2203_v17  ;;  %463 = vst [vmem:[%s2066_s24 + $0x70] sm:$0xff] %v2205_v18  ;;  %v1294_v20 = vadd.f32 -14.285714, %v2205_v18 }
 0x1a7   : > { %v2213_v21 = vpop.eup %1577  ;;  %1597 = vpow2.f32 %v489_v11  ;;  %v495_v22 = vmul.f32 1.442695, %v1287_v15  ;;  %v511_v23 = vmul.f32 1.442695, %v1295_v16  ;;  %v2251_v48 = vshrl.u32 (!%p2094_p0), %v533_v43, 7  ;;  %v571_v56 = vld [vmem:[#allocation2] sm:$0xff] (!%p2094_p0) }
 0x1a8   : > { %v2215_v24 = vpop.eup %1579  ;;  %1599 = vpow2.f32 %v505_v12  ;;  %v493_v25 = vmul.f32 1.442695, %v1286_v19  ;;  %v509_v26 = vmul.f32 1.442695, %v1294_v20  ;;  %v568_v49 = vand.u32 (!%p2094_p0), 127, %v533_v43  ;;  %v572_v7 = vld [vmem:[#allocation2 + $0x8] sm:$0xff] (!%p2094_p0) }
 0x1a9   : > { %v2217_v27 = vpop.eup %1581  ;;  %1601 = vpow2.f32 %v495_v22  ;;  %v551_v50 = vadd.s32 (!%p2094_p0), %v2248_v44, %v2251_v48  ;;  %v535_v52 = vadd.s32 (!%p2094_p0), 8, %v2251_v48  ;;  %v536_v55 = vadd.s32 (!%p2094_p0), 16, %v2251_v48  ;;  %v573_v8 = vld [vmem:[#allocation2 + $0x10] sm:$0xff] (!%p2094_p0)  ;;  %v574_v15 = vld [vmem:[#allocation2 + $0x18] sm:$0xff] (!%p2094_p0)  ;;  %v575_v16 = vld [vmem:[#allocation2 + $0x20] sm:$0xff] (!%p2094_p0) }
 0x1aa   : > { %v2219_v28 = vpop.eup %1583  ;;  %1603 = vpow2.f32 %v511_v23  ;;  %v2255_v51 = vadd.s32 (!%p2094_p0), %v569_v47, %v568_v49  ;;  %v537_v59 = vadd.s32 (!%p2094_p0), 24, %v2251_v48  ;;  %v538_v60 = vadd.s32 (!%p2094_p0), 32, %v2251_v48  ;;  %v576_v47 = vld [vmem:[#allocation2 + $0x28] sm:$0xff] (!%p2094_p0)  ;;  %v577_v49 = vld [vmem:[#allocation2 + $0x30] sm:$0xff] (!%p2094_p0) }
 0x1ab   : > { %v2221_v29 = vpop.eup %1585  ;;  %1605 = vpow2.f32 %v493_v25  ;;  %v539_v61 = vadd.s32 (!%p2094_p0), 40, %v2251_v48  ;;  %v540_v62 = vadd.s32 (!%p2094_p0), 48, %v2251_v48  ;;  %v552_v63 = vadd.s32 (!%p2094_p0), %v2248_v44, %v535_v52 }
 0x1ac   : > { %v2223_v30 = vpop.eup %1587  ;;  %1607 = vpow2.f32 %v509_v26  ;;  %vm587_vm0 = vcmp.eq.s32.totalorder (!%p2094_p0), %v551_v50, %v2255_v51  ;;  %v553_v0 = vadd.s32 (!%p2094_p0), %v2248_v44, %v536_v55  ;;  %v541_v3 = vadd.s32 (!%p2094_p0), 56, %v2251_v48 }
 0x1ad   : > { %v2225_v31 = vpop.eup %1589  ;;  %v603_v4 = vsel (!%p2094_p0), %vm587_vm0, 0.0, %v2217_v27  ;;  %v554_v9 = vadd.s32 (!%p2094_p0), %v2248_v44, %v537_v59  ;;  %v555_v10 = vadd.s32 (!%p2094_p0), %v2248_v44, %v538_v60  ;;  %v556_v11 = vadd.s32 (!%p2094_p0), %v2248_v44, %v539_v61 }
 0x1ae   : > { %v2227_v32 = vpop.eup %1591  ;;  %v635_v12 = vadd.f32 (!%p2094_p0), %v603_v4, %v571_v56  ;;  %vm588_vm1 = vcmp.eq.s32.totalorder (!%p2094_p0), %v552_v63, %v2255_v51  ;;  %vm589_vm2 = vcmp.eq.s32.totalorder (!%p2094_p0), %v553_v0, %v2255_v51  ;;  %v557_v19 = vadd.s32 (!%p2094_p0), %v2248_v44, %v540_v62  ;;  %v578_v63 = vld [vmem:[#allocation2 + $0x38] sm:$0xff] (!%p2094_p0) }
 0x1af   : > { %v2229_v33 = vpop.eup %1593  ;;  %v604_v20 = vsel (!%p2094_p0), %vm588_vm1, 0.0, %v2213_v21  ;;  %v605_v22 = vsel (!%p2094_p0), %vm589_vm2, 0.0, %v2225_v31  ;;  %vm590_vm3 = vcmp.eq.s32.totalorder (!%p2094_p0), %v554_v9, %v2255_v51  ;;  %vm591_vm4 = vcmp.eq.s32.totalorder (!%p2094_p0), %v555_v10, %v2255_v51  ;;  %v579_v10 = vld [vmem:[#allocation2 + $0x40] sm:$0xff] (!%p2094_p0) }
 0x1b0   : > { %v2231_v34 = vpop.eup %1595  ;;  %532 = sbr.rel (%p2094_p0) target bundleno = 452 (0x1c4), region = 44  ;;  %651 = vst [vmem:[#allocation2] sm:$0xff] (!%p2094_p0), %v635_v12  ;;  %v636_v23 = vadd.f32 (!%p2094_p0), %v604_v20, %v572_v7  ;;  %v637_v25 = vadd.f32 (!%p2094_p0), %v605_v22, %v573_v8  ;;  %v606_v26 = vsel (!%p2094_p0), %vm590_vm3, 0.0, %v2221_v29  ;;  %vm592_vm5 = vcmp.eq.s32.totalorder (!%p2094_p0), %v556_v11, %v2255_v51  ;;  %v581_v20 = vld [vmem:[#allocation2 + $0x50] sm:$0xff] (!%p2094_p0) }
 0x1b1   : > { %v2233_v35 = vpop.eup %1597  ;;  %v638_v50 = vadd.f32 (!%p2094_p0), %v606_v26, %v574_v15  ;;  %vm593_vm6 = vcmp.eq.s32.totalorder (!%p2094_p0), %v557_v19, %v2255_v51  ;;  %v608_v55 = vsel (!%p2094_p0), %vm592_vm5, 0.0, %v2229_v33  ;;  %v558_v59 = vadd.s32 (!%p2094_p0), %v2248_v44, %v541_v3  ;;  %v580_v19 = vld [vmem:[#allocation2 + $0x48] sm:$0xff] (!%p2094_p0)  ;;  %v582_v26 = vld [vmem:[#allocation2 + $0x58] sm:$0xff] (!%p2094_p0) }
 0x1b2   : > { %v2235_v36 = vpop.eup %1599  ;;  %v607_v43 = vsel (!%p2094_p0), %vm591_vm4, 0.0, %v2233_v35  ;;  %652 = vst [vmem:[#allocation2 + $0x8] sm:$0xff] (!%p2094_p0), %v636_v23  ;;  %653 = vst [vmem:[#allocation2 + $0x10] sm:$0xff] (!%p2094_p0), %v637_v25  ;;  %v542_v60 = vadd.s32 (!%p2094_p0), 64, %v2251_v48  ;;  %v640_v61 = vadd.f32 (!%p2094_p0), %v608_v55, %v576_v47  ;;  %v543_v0 = vadd.s32 (!%p2094_p0), 72, %v2251_v48 }
 0x1b3   : > { %v2237_v37 = vpop.eup %1601  ;;  %v639_v52 = vadd.f32 (!%p2094_p0), %v607_v43, %v575_v16  ;;  %654 = vst [vmem:[#allocation2 + $0x18] sm:$0xff] (!%p2094_p0), %v638_v50  ;;  %v544_v4 = vadd.s32 (!%p2094_p0), 80, %v2251_v48  ;;  %vm594_vm7 = vcmp.eq.s32.totalorder (!%p2094_p0), %v558_v59, %v2255_v51  ;;  %v545_v8 = vadd.s32 (!%p2094_p0), 88, %v2251_v48 }
 0x1b4   : > { %v2239_v38 = vpop.eup %1603  ;;  %v559_v7 = vadd.s32 (!%p2094_p0), %v2248_v44, %v542_v60  ;;  %v546_v9 = vadd.s32 (!%p2094_p0), 96, %v2251_v48  ;;  %656 = vst [vmem:[#allocation2 + $0x28] sm:$0xff] (!%p2094_p0), %v640_v61  ;;  %v610_v3 = vsel (!%p2094_p0), %vm594_vm7, 0.0, %v2237_v37  ;;  %v560_v11 = vadd.s32 (!%p2094_p0), %v2248_v44, %v543_v0  ;;  %v584_v60 = vld [vmem:[#allocation2 + $0x68] sm:$0xff] (!%p2094_p0) }
 0x1b5   : > { %v2241_v39 = vpop.eup %1605  ;;  %655 = vst [vmem:[#allocation2 + $0x20] sm:$0xff] (!%p2094_p0), %v639_v52  ;;  %v561_v12 = vadd.s32 (!%p2094_p0), %v2248_v44, %v544_v4  ;;  %v547_v15 = vadd.s32 (!%p2094_p0), 104, %v2251_v48  ;;  %v642_v16 = vadd.f32 (!%p2094_p0), %v610_v3, %v578_v63  ;;  %v562_v22 = vadd.s32 (!%p2094_p0), %v2248_v44, %v545_v8  ;;  %v583_v52 = vld [vmem:[#allocation2 + $0x60] sm:$0xff] (!%p2094_p0)  ;;  %v585_v3 = vld [vmem:[#allocation2 + $0x70] sm:$0xff] (!%p2094_p0) }
 0x1b6   : > { %v2243_v40 = vpop.eup %1607  ;;  %v609_v56 = vsel (!%p2094_p0), %vm593_vm6, 0.0, %v2241_v39  ;;  %vm595_vm8 = vcmp.eq.s32.totalorder (!%p2094_p0), %v559_v7, %v2255_v51  ;;  %v563_v23 = vadd.s32 (!%p2094_p0), %v2248_v44, %v546_v9  ;;  %vm596_vm9 = vcmp.eq.s32.totalorder (!%p2094_p0), %v560_v11, %v2255_v51  ;;  %v586_v11 = vld [vmem:[#allocation2 + $0x78] sm:$0xff] (!%p2094_p0) }
 0x1b7   : > { %v641_v62 = vadd.f32 %v609_v56, %v577_v49  ;;  %v611_v25 = vsel %vm595_vm8, 0.0, %v2219_v28  ;;  %vm597_vm10 = vcmp.eq.s32.totalorder %v561_v12, %v2255_v51  ;;  %v564_v43 = vadd.s32 %v2248_v44, %v547_v15  ;;  %658 = vst [vmem:[#allocation2 + $0x38] sm:$0xff] %v642_v16 }
 0x1b8   : > { %v643_v47 = vadd.f32 %v611_v25, %v579_v10  ;;  %v612_v49 = vsel %vm596_vm9, 0.0, %v2215_v24  ;;  %v613_v50 = vsel %vm597_vm10, 0.0, %v2227_v32  ;;  %vm598_vm11 = vcmp.eq.s32.totalorder %v562_v22, %v2255_v51 }
 0x1b9   : > { %657 = vst [vmem:[#allocation2 + $0x30] sm:$0xff] %v641_v62  ;;  %v644_v55 = vadd.f32 %v612_v49, %v580_v19  ;;  %v645_v56 = vadd.f32 %v613_v50, %v581_v20  ;;  %v614_v59 = vsel %vm598_vm11, 0.0, %v2223_v30  ;;  %vm599_vm12 = vcmp.eq.s32.totalorder %v563_v23, %v2255_v51 }
 0x1ba   : > { %659 = vst [vmem:[#allocation2 + $0x40] sm:$0xff] %v643_v47  ;;  %v646_v61 = vadd.f32 %v614_v59, %v582_v26  ;;  %v615_v62 = vsel %vm599_vm12, 0.0, %v2235_v36  ;;  %vm600_vm13 = vcmp.eq.s32.totalorder %v564_v43, %v2255_v51  ;;  %v548_v63 = vadd.s32 112, %v2251_v48 }
 0x1bb   : > { %660 = vst [vmem:[#allocation2 + $0x48] sm:$0xff] %v644_v55  ;;  %661 = vst [vmem:[#allocation2 + $0x50] sm:$0xff] %v645_v56  ;;  %v647_v0 = vadd.f32 %v615_v62, %v583_v52  ;;  %v616_v4 = vsel %vm600_vm13, 0.0, %v2231_v34  ;;  %v549_v7 = vadd.s32 120, %v2251_v48 }
 0x1bc   : > { %662 = vst [vmem:[#allocation2 + $0x58] sm:$0xff] %v646_v61  ;;  %v648_v8 = vadd.f32 %v616_v4, %v584_v60  ;;  %v565_v9 = vadd.s32 %v2248_v44, %v548_v63 }
 0x1bd   : > { %663 = vst [vmem:[#allocation2 + $0x60] sm:$0xff] %v647_v0  ;;  %v566_v10 = vadd.s32 %v2248_v44, %v549_v7 }
 0x1be   : > { %664 = vst [vmem:[#allocation2 + $0x68] sm:$0xff] %v648_v8  ;;  %vm601_vm14 = vcmp.eq.s32.totalorder %v565_v9, %v2255_v51 }
 0x1bf   : > { %v617_v12 = vsel %vm601_vm14, 0.0, %v2243_v40  ;;  %vm602_vm15 = vcmp.eq.s32.totalorder %v566_v10, %v2255_v51 }
 0x1c0   : > { %v649_v15 = vadd.f32 %v617_v12, %v585_v3  ;;  %v618_v16 = vsel %vm602_vm15, 0.0, %v2239_v38 }
 0x1c1   : > { %v650_v48 = vadd.f32 %v618_v16, %v586_v11 }
 0x1c2   : > { %665 = vst [vmem:[#allocation2 + $0x70] sm:$0xff] %v649_v15 }
 0x1c3   : > { %666 = vst [vmem:[#allocation2 + $0x78] sm:$0xff] %v650_v48 }
 0x1c4 PF: > { %669 = sbr.rel (!%p2094_p0) target bundleno = 464 (0x1d0), region = 48  ;;  %v670_v19 = vld [vmem:[#allocation2] sm:$0xff] (%p2094_p0)  ;;  %v676_v52 = vld [vmem:[#allocation2 + $0x30] sm:$0xff] (%p2094_p0)  ;;  %v679_v59 = vld [vmem:[#allocation2 + $0x48] sm:$0xff] (%p2094_p0) }
 0x1c5   : > { %v702_v22 = vadd.f32 (%p2094_p0), %v2217_v27, %v670_v19  ;;  %v678_v56 = vld [vmem:[#allocation2 + $0x40] sm:$0xff] (%p2094_p0)  ;;  %v708_v27 = vadd.f32 (%p2094_p0), %v2241_v39, %v676_v52  ;;  %v680_v60 = vld [vmem:[#allocation2 + $0x50] sm:$0xff] (%p2094_p0)  ;;  %v681_v61 = vld [vmem:[#allocation2 + $0x58] sm:$0xff] (%p2094_p0) }
 0x1c6   : > { %v671_v44 = vld [vmem:[#allocation2 + $0x8] sm:$0xff] (%p2094_p0)  ;;  %v672_v20 = vld [vmem:[#allocation2 + $0x10] sm:$0xff] (%p2094_p0)  ;;  %v682_v62 = vld [vmem:[#allocation2 + $0x60] sm:$0xff] (%p2094_p0) }
 0x1c7   : > { %v703_v23 = vadd.f32 (%p2094_p0), %v2213_v21, %v671_v44  ;;  %v704_v25 = vadd.f32 (%p2094_p0), %v2225_v31, %v672_v20  ;;  %v673_v51 = vld [vmem:[#allocation2 + $0x18] sm:$0xff] (%p2094_p0)  ;;  %718 = vst [vmem:[#allocation2] sm:$0xff] (%p2094_p0), %v702_v22  ;;  %v710_v31 = vadd.f32 (%p2094_p0), %v2219_v28, %v678_v56  ;;  %v683_v63 = vld [vmem:[#allocation2 + $0x68] sm:$0xff] (%p2094_p0)  ;;  %724 = vst [vmem:[#allocation2 + $0x30] sm:$0xff] (%p2094_p0), %v708_v27 }
 0x1c8   : > { %v675_v43 = vld [vmem:[#allocation2 + $0x28] sm:$0xff] (%p2094_p0)  ;;  %v705_v47 = vadd.f32 (%p2094_p0), %v2221_v29, %v673_v51  ;;  %v711_v29 = vadd.f32 (%p2094_p0), %v2215_v24, %v679_v59  ;;  %v714_v28 = vadd.f32 (%p2094_p0), %v2235_v36, %v682_v62 }
 0x1c9   : > { %v674_v26 = vld [vmem:[#allocation2 + $0x20] sm:$0xff] (%p2094_p0)  ;;  %v707_v50 = vadd.f32 (%p2094_p0), %v2229_v33, %v675_v43  ;;  %719 = vst [vmem:[#allocation2 + $0x8] sm:$0xff] (%p2094_p0), %v703_v23  ;;  %720 = vst [vmem:[#allocation2 + $0x10] sm:$0xff] (%p2094_p0), %v704_v25  ;;  %v712_v33 = vadd.f32 (%p2094_p0), %v2227_v32, %v680_v60  ;;  %v684_v0 = vld [vmem:[#allocation2 + $0x70] sm:$0xff] (%p2094_p0) }
 0x1ca   : > { %v706_v49 = vadd.f32 (%p2094_p0), %v2233_v35, %v674_v26  ;;  %721 = vst [vmem:[#allocation2 + $0x18] sm:$0xff] (%p2094_p0), %v705_v47  ;;  %v713_v35 = vadd.f32 (%p2094_p0), %v2223_v30, %v681_v61  ;;  %726 = vst [vmem:[#allocation2 + $0x40] sm:$0xff] (%p2094_p0), %v710_v31  ;;  %v716_v39 = vadd.f32 (%p2094_p0), %v2243_v40, %v684_v0  ;;  %v685_v4 = vld [vmem:[#allocation2 + $0x78] sm:$0xff] (%p2094_p0) }
 0x1cb   : > { %v677_v55 = vld [vmem:[#allocation2 + $0x38] sm:$0xff]  ;;  %723 = vst [vmem:[#allocation2 + $0x28] sm:$0xff] %v707_v50  ;;  %727 = vst [vmem:[#allocation2 + $0x48] sm:$0xff] %v711_v29  ;;  %v717_v24 = vadd.f32 %v2239_v38, %v685_v4 }
 0x1cc   : > { %v709_v21 = vadd.f32 %v2237_v37, %v677_v55  ;;  %722 = vst [vmem:[#allocation2 + $0x20] sm:$0xff] %v706_v49  ;;  %v715_v37 = vadd.f32 %v2231_v34, %v683_v63  ;;  %728 = vst [vmem:[#allocation2 + $0x50] sm:$0xff] %v712_v33 }
 0x1cd   : > { %729 = vst [vmem:[#allocation2 + $0x58] sm:$0xff] %v713_v35  ;;  %730 = vst [vmem:[#allocation2 + $0x60] sm:$0xff] %v714_v28 }
 0x1ce   : > { %725 = vst [vmem:[#allocation2 + $0x38] sm:$0xff] %v709_v21  ;;  %731 = vst [vmem:[#allocation2 + $0x68] sm:$0xff] %v715_v37 }
 0x1cf   : > { %732 = vst [vmem:[#allocation2 + $0x70] sm:$0xff] %v716_v39  ;;  %733 = vst [vmem:[#allocation2 + $0x78] sm:$0xff] %v717_v24 }
 0x1d0 PF: > { %736 = sbr.rel (!%p2105_p3) target bundleno = 506 (0x1fa), region = 52  ;;  %v737_v30 = vlaneseq (%p2105_p3)  ;;  %v2340_v32 = vstv (%p2105_p3), %s2073_s8  ;;  %v773_v34 = vstv (%p2105_p3), %s2070_s25  ;;  %v855_v31 = vld [vmem:[#allocation3] sm:$0xff] (%p2105_p3)  ;;  %v856_v0 = vld [vmem:[#allocation3 + $0x8] sm:$0xff] (%p2105_p3)  ;;  %v857_v28 = vld [vmem:[#allocation3 + $0x10] sm:$0xff] (%p2105_p3) }
 0x1d2   : > { %v2343_v36 = vshrl.u32 (%p2105_p3), %v737_v30, 7  ;;  %v772_v40 = vand.u32 (%p2105_p3), 127, %v737_v30  ;;  %v858_v30 = vld [vmem:[#allocation3 + $0x18] sm:$0xff] (%p2105_p3) }
 0x1d4   : > { %v755_v38 = vadd.s32 (%p2105_p3), %v2340_v32, %v2343_v36  ;;  %v2347_v7 = vadd.s32 (%p2105_p3), %v773_v34, %v772_v40  ;;  %v739_v8 = vadd.s32 (%p2105_p3), 8, %v2343_v36  ;;  %v740_v9 = vadd.s32 (%p2105_p3), 16, %v2343_v36  ;;  %v859_v34 = vld [vmem:[#allocation3 + $0x20] sm:$0xff] (%p2105_p3) }
 0x1d5   : > { %v741_v3 = vadd.s32 (%p2105_p3), 24, %v2343_v36  ;;  %v742_v10 = vadd.s32 (%p2105_p3), 32, %v2343_v36  ;;  %v743_v11 = vadd.s32 (%p2105_p3), 40, %v2343_v36  ;;  %v744_v12 = vadd.s32 (%p2105_p3), 48, %v2343_v36 }
 0x1d6   : > { %v775_v15 = vsub.s32 (%p2105_p3), %v755_v38, %v2347_v7  ;;  %v756_v16 = vadd.s32 (%p2105_p3), %v2340_v32, %v739_v8  ;;  %v757_v48 = vadd.s32 (%p2105_p3), %v2340_v32, %v740_v9  ;;  %v745_v19 = vadd.s32 (%p2105_p3), 56, %v2343_v36 }
 0x1d7   : > { %v758_v44 = vadd.s32 %v2340_v32, %v741_v3  ;;  %v759_v20 = vadd.s32 %v2340_v32, %v742_v10  ;;  %v760_v22 = vadd.s32 %v2340_v32, %v743_v11  ;;  %v761_v23 = vadd.s32 %v2340_v32, %v744_v12  ;;  %v860_v11 = vld [vmem:[#allocation3 + $0x28] sm:$0xff]  ;;  %v861_v12 = vld [vmem:[#allocation3 + $0x30] sm:$0xff] }
 0x1d8   : > { %v792_v25 = vsub.s32 0, %v775_v15  ;;  %v776_v51 = vsub.s32 %v756_v16, %v2347_v7  ;;  %v777_v26 = vsub.s32 %v757_v48, %v2347_v7  ;;  %v762_v43 = vadd.s32 %v2340_v32, %v745_v19 }
 0x1d9   : > { %v778_v47 = vsub.s32 %v758_v44, %v2347_v7  ;;  %v779_v49 = vsub.s32 %v759_v20, %v2347_v7  ;;  %v780_v50 = vsub.s32 %v760_v22, %v2347_v7  ;;  %v781_v52 = vsub.s32 %v761_v23, %v2347_v7 }
 0x1da   : > { %v1297_v55 = vmin.u32 %v792_v25, %v775_v15  ;;  %v795_v56 = vsub.s32 0, %v776_v51  ;;  %v798_v27 = vsub.s32 0, %v777_v26  ;;  %v782_v21 = vsub.s32 %v762_v43, %v2347_v7 }
 0x1db   : > { %v801_v59 = vsub.s32 0, %v778_v47  ;;  %v804_v60 = vsub.s32 0, %v779_v49  ;;  %v807_v61 = vsub.s32 0, %v780_v50  ;;  %v810_v29 = vsub.s32 0, %v781_v52 }
 0x1dc   : > { %vm839_vm0 = vcmp.eq.s32.totalorder %v1297_v55, 128  ;;  %v1298_v33 = vmin.u32 %v795_v56, %v776_v51  ;;  %v1299_v35 = vmin.u32 %v798_v27, %v777_v26  ;;  %v813_v62 = vsub.s32 0, %v782_v21 }
 0x1dd   : > { %v871_v63 = vsel %vm839_vm0, %v2143_v45, 0.0  ;;  %v1300_v37 = vmin.u32 %v801_v59, %v778_v47  ;;  %v1301_v39 = vmin.u32 %v804_v60, %v779_v49  ;;  %v1302_v4 = vmin.u32 %v807_v61, %v780_v50 }
 0x1de   : > { %v903_v24 = vadd.f32 %v871_v63, %v855_v31  ;;  %vm840_vm1 = vcmp.eq.s32.totalorder %v1298_v33, 128  ;;  %vm841_vm2 = vcmp.eq.s32.totalorder %v1299_v35, 128  ;;  %v1303_v40 = vmin.u32 %v810_v29, %v781_v52 }
 0x1df   : > { %v872_v38 = vsel %vm840_vm1, %v2133_v41, 0.0  ;;  %v873_v8 = vsel %vm841_vm2, %v2163_v57, 0.0  ;;  %vm842_vm3 = vcmp.eq.s32.totalorder %v1300_v37, 128  ;;  %vm843_vm4 = vcmp.eq.s32.totalorder %v1301_v39, 128  ;;  %v863_v37 = vld [vmem:[#allocation3 + $0x40] sm:$0xff] }
 0x1e0   : > { %919 = vst [vmem:[#allocation3] sm:$0xff] %v903_v24  ;;  %v904_v9 = vadd.f32 %v872_v38, %v856_v0  ;;  %v905_v45 = vadd.f32 %v873_v8, %v857_v28  ;;  %v874_v3 = vsel %vm842_vm3, %v2153_v53, 0.0  ;;  %v875_v10 = vsel %vm843_vm4, %v2183_v5, 0.0  ;;  %v862_v5 = vld [vmem:[#allocation3 + $0x38] sm:$0xff] }
 0x1e1   : > { %v906_v15 = vadd.f32 %v874_v3, %v858_v30  ;;  %v907_v16 = vadd.f32 %v875_v10, %v859_v34  ;;  %vm844_vm5 = vcmp.eq.s32.totalorder %v1302_v4, 128  ;;  %vm845_vm6 = vcmp.eq.s32.totalorder %v1303_v40, 128  ;;  %v864_v34 = vld [vmem:[#allocation3 + $0x48] sm:$0xff] }
 0x1e2   : > { %920 = vst [vmem:[#allocation3 + $0x8] sm:$0xff] %v904_v9  ;;  %921 = vst [vmem:[#allocation3 + $0x10] sm:$0xff] %v905_v45  ;;  %v876_v41 = vsel %vm844_vm5, %v2173_v1, 0.0  ;;  %v877_v57 = vsel %vm845_vm6, %v2203_v17, 0.0  ;;  %v1304_v48 = vmin.u32 %v813_v62, %v782_v21  ;;  %v746_v19 = vadd.s32 64, %v2343_v36  ;;  %v866_v45 = vld [vmem:[#allocation3 + $0x58] sm:$0xff] }
 0x1e3   : > { %922 = vst [vmem:[#allocation3 + $0x18] sm:$0xff] %v906_v15  ;;  %923 = vst [vmem:[#allocation3 + $0x20] sm:$0xff] %v907_v16  ;;  %v908_v53 = vadd.f32 %v876_v41, %v860_v11  ;;  %v909_v44 = vadd.f32 %v877_v57, %v861_v12  ;;  %v747_v20 = vadd.s32 72, %v2343_v36  ;;  %v748_v22 = vadd.s32 80, %v2343_v36  ;;  %v867_v12 = vld [vmem:[#allocation3 + $0x60] sm:$0xff]  ;;  %v868_v57 = vld [vmem:[#allocation3 + $0x68] sm:$0xff] }
 0x1e4   : > { %vm846_vm7 = vcmp.eq.s32.totalorder %v1304_v48, 128  ;;  %v763_v23 = vadd.s32 %v2340_v32, %v746_v19  ;;  %v749_v25 = vadd.s32 88, %v2343_v36  ;;  %v750_v1 = vadd.s32 96, %v2343_v36 }
 0x1e5   : > { %924 = vst [vmem:[#allocation3 + $0x28] sm:$0xff] %v908_v53  ;;  %925 = vst [vmem:[#allocation3 + $0x30] sm:$0xff] %v909_v44  ;;  %v878_v17 = vsel %vm846_vm7, %v2193_v13, 0.0  ;;  %v764_v51 = vadd.s32 %v2340_v32, %v747_v20  ;;  %v765_v26 = vadd.s32 %v2340_v32, %v748_v22  ;;  %v751_v43 = vadd.s32 104, %v2343_v36  ;;  %v870_v20 = vld [vmem:[#allocation3 + $0x78] sm:$0xff] }
 0x1e6   : > { %v910_v47 = vadd.f32 %v878_v17, %v862_v5  ;;  %v783_v49 = vsub.s32 %v763_v23, %v2347_v7  ;;  %v766_v50 = vadd.s32 %v2340_v32, %v749_v25  ;;  %v767_v52 = vadd.s32 %v2340_v32, %v750_v1  ;;  %v869_v5 = vld [vmem:[#allocation3 + $0x70] sm:$0xff] }
 0x1e7   : > { %v784_v55 = vsub.s32 %v764_v51, %v2347_v7  ;;  %v785_v56 = vsub.s32 %v765_v26, %v2347_v7  ;;  %v768_v27 = vadd.s32 %v2340_v32, %v751_v43  ;;  %v752_v13 = vadd.s32 112, %v2343_v36 }
 0x1e8   : > { %926 = vst [vmem:[#allocation3 + $0x38] sm:$0xff] %v910_v47  ;;  %v816_v21 = vsub.s32 0, %v783_v49  ;;  %v786_v31 = vsub.s32 %v766_v50, %v2347_v7  ;;  %v787_v59 = vsub.s32 %v767_v52, %v2347_v7  ;;  %v753_v60 = vadd.s32 120, %v2343_v36  ;;  %v865_v36 = vld [vmem:[#allocation3 + $0x50] sm:$0xff] }
 0x1e9   : > { %v819_v61 = vsub.s32 0, %v784_v55  ;;  %v822_v29 = vsub.s32 0, %v785_v56  ;;  %v788_v33 = vsub.s32 %v768_v27, %v2347_v7  ;;  %v769_v35 = vadd.s32 %v2340_v32, %v752_v13 }
 0x1ea   : > { %v1305_v62 = vmin.u32 %v816_v21, %v783_v49  ;;  %v825_v63 = vsub.s32 0, %v786_v31  ;;  %v828_v0 = vsub.s32 0, %v787_v59  ;;  %v770_v28 = vadd.s32 %v2340_v32, %v753_v60 }
 0x1eb   : > { %v1306_v39 = vmin.u32 %v819_v61, %v784_v55  ;;  %v1307_v4 = vmin.u32 %v822_v29, %v785_v56  ;;  %v831_v24 = vsub.s32 0, %v788_v33  ;;  %v789_v30 = vsub.s32 %v769_v35, %v2347_v7 }
 0x1ec   : > { %vm847_vm8 = vcmp.eq.s32.totalorder %v1305_v62, 128  ;;  %v1308_v40 = vmin.u32 %v825_v63, %v786_v31  ;;  %v1309_v38 = vmin.u32 %v828_v0, %v787_v59  ;;  %v790_v8 = vsub.s32 %v770_v28, %v2347_v7 }
 0x1ed   : > { %v879_v9 = vsel %vm847_vm8, %v2145_v46, 0.0  ;;  %vm848_vm9 = vcmp.eq.s32.totalorder %v1306_v39, 128  ;;  %vm849_vm10 = vcmp.eq.s32.totalorder %v1307_v4, 128  ;;  %v1310_v3 = vmin.u32 %v831_v24, %v788_v33 }
 0x1ee   : > { %v911_v32 = vadd.f32 %v879_v9, %v863_v37  ;;  %v880_v10 = vsel %vm848_vm9, %v2135_v42, 0.0  ;;  %v881_v11 = vsel %vm849_vm10, %v2165_v58, 0.0  ;;  %vm850_vm11 = vcmp.eq.s32.totalorder %v1308_v40, 128 }
 0x1ef   : > { %v912_v15 = vadd.f32 %v880_v10, %v864_v34  ;;  %v913_v16 = vadd.f32 %v881_v11, %v865_v36  ;;  %v882_v41 = vsel %vm850_vm11, %v2155_v54, 0.0  ;;  %vm851_vm12 = vcmp.eq.s32.totalorder %v1309_v38, 128 }
 0x1f0   : > { %927 = vst [vmem:[#allocation3 + $0x40] sm:$0xff] %v911_v32  ;;  %v914_v7 = vadd.f32 %v882_v41, %v866_v45  ;;  %v883_v46 = vsel %vm851_vm12, %v2185_v6, 0.0  ;;  %vm852_vm13 = vcmp.eq.s32.totalorder %v1310_v3, 128  ;;  %v834_v48 = vsub.s32 0, %v789_v30 }
 0x1f1   : > { %928 = vst [vmem:[#allocation3 + $0x48] sm:$0xff] %v912_v15  ;;  %929 = vst [vmem:[#allocation3 + $0x50] sm:$0xff] %v913_v16  ;;  %v915_v19 = vadd.f32 %v883_v46, %v867_v12  ;;  %v884_v42 = vsel %vm852_vm13, %v2175_v2, 0.0  ;;  %v837_v58 = vsub.s32 0, %v790_v8 }
 0x1f2   : > { %930 = vst [vmem:[#allocation3 + $0x58] sm:$0xff] %v914_v7  ;;  %v916_v53 = vadd.f32 %v884_v42, %v868_v57  ;;  %v1311_v44 = vmin.u32 %v834_v48, %v789_v30 }
 0x1f3   : > { %931 = vst [vmem:[#allocation3 + $0x60] sm:$0xff] %v915_v19  ;;  %v1312_v54 = vmin.u32 %v837_v58, %v790_v8 }
 0x1f4   : > { %932 = vst [vmem:[#allocation3 + $0x68] sm:$0xff] %v916_v53  ;;  %vm853_vm14 = vcmp.eq.s32.totalorder %v1311_v44, 128 }
 0x1f5   : > { %v885_v22 = vsel %vm853_vm14, %v2205_v18, 0.0  ;;  %vm854_vm15 = vcmp.eq.s32.totalorder %v1312_v54, 128 }
 0x1f6   : > { %v917_v6 = vadd.f32 %v885_v22, %v869_v5  ;;  %v886_v23 = vsel %vm854_vm15, %v2195_v14, 0.0 }
 0x1f7   : > { %v918_v25 = vadd.f32 %v886_v23, %v870_v20 }
 0x1f8   : > { %933 = vst [vmem:[#allocation3 + $0x70] sm:$0xff] %v917_v6 }
 0x1f9   : > { %934 = vst [vmem:[#allocation3 + $0x78] sm:$0xff] %v918_v25 }
 0x1fa PF: > { %p1313_p4 = scmp.ne.s32.totalorder %s1809_s18, 1 }
 0x1fb   : > { %v941_v2 = vld [vmem:[#allocation2 + $0x10] sm:$0xff] (!%p1313_p4)  ;;  %v939_v1 = vld [vmem:[#allocation2] sm:$0xff] (!%p1313_p4)  ;;  %v942_v17 = vld [vmem:[#allocation2 + $0x18] sm:$0xff] (!%p1313_p4)  ;;  %vm1099_vm0 = vcmask (!%p1313_p4), 7168  }
 0x1fc   : > { %938 = sbr.rel (%p1313_p4) target bundleno = 713 (0x2c9), region = 56  ;;  %959 = vadd.xlane.f32.xlu1 (!%p1313_p4), %v941_v2  ;;  %955 = vadd.xlane.f32.xlu0 (!%p1313_p4), %v939_v1  ;;  %v940_v51 = vld [vmem:[#allocation2 + $0x8] sm:$0xff] (!%p1313_p4)  ;;  %v943_v26 = vld [vmem:[#allocation2 + $0x20] sm:$0xff] (!%p1313_p4)  ;;  %v946_v14 = vld [vmem:[#allocation2 + $0x38] sm:$0xff] (!%p1313_p4) }
 0x1fd   : > { %v944_v18 = vld [vmem:[#allocation2 + $0x28] sm:$0xff] (!%p1313_p4)  ;;  %v945_v43 = vld [vmem:[#allocation2 + $0x30] sm:$0xff] (!%p1313_p4)  ;;  %v947_v49 = vld [vmem:[#allocation2 + $0x40] sm:$0xff] (!%p1313_p4) }
 0x1fe   : > { %v948_v47 = vld [vmem:[#allocation2 + $0x48] sm:$0xff] (!%p1313_p4)  ;;  %v950_v50 = vld [vmem:[#allocation2 + $0x58] sm:$0xff] (!%p1313_p4)  ;;  %v949_v52 = vld [vmem:[#allocation2 + $0x50] sm:$0xff] (!%p1313_p4) }
 0x1ff   : > { %v952_v55 = vld [vmem:[#allocation2 + $0x68] sm:$0xff] (!%p1313_p4)  ;;  %v951_v56 = vld [vmem:[#allocation2 + $0x60] sm:$0xff] (!%p1313_p4)  ;;  %v954_v27 = vld [vmem:[#allocation2 + $0x78] sm:$0xff] (!%p1313_p4) }
 0x200   : > { %961 = vadd.xlane.f32.xlu1 (!%p1313_p4), %v942_v17  ;;  %957 = vadd.xlane.f32.xlu0 (!%p1313_p4), %v940_v51  ;;  %v953_v13 = vld [vmem:[#allocation2 + $0x70] sm:$0xff] (!%p1313_p4)  ;;  %v988_v21 = vld [vmem:[#allocation3 + $0x8] sm:$0xff] (!%p1313_p4)  ;;  %v987_v31 = vld [vmem:[#allocation3] sm:$0xff] (!%p1313_p4) }
 0x201   : > { %v990_v59 = vld [vmem:[#allocation3 + $0x18] sm:$0xff] (!%p1313_p4)  ;;  %v989_v60 = vld [vmem:[#allocation3 + $0x10] sm:$0xff] (!%p1313_p4)  ;;  %v992_v61 = vld [vmem:[#allocation3 + $0x28] sm:$0xff] (!%p1313_p4) }
 0x202   : > { %v991_v29 = vld [vmem:[#allocation3 + $0x20] sm:$0xff] (!%p1313_p4)  ;;  %v994_v33 = vld [vmem:[#allocation3 + $0x38] sm:$0xff] (!%p1313_p4)  ;;  %v993_v35 = vld [vmem:[#allocation3 + $0x30] sm:$0xff] (!%p1313_p4) }
 0x203   : > { %v996_v62 = vld [vmem:[#allocation3 + $0x48] sm:$0xff]  ;;  %v995_v63 = vld [vmem:[#allocation3 + $0x40] sm:$0xff]  ;;  %v998_v0 = vld [vmem:[#allocation3 + $0x58] sm:$0xff] }
 0x204   : > { %965 = vadd.xlane.f32.xlu1 %v944_v18  ;;  %963 = vadd.xlane.f32.xlu0 %v943_v26  ;;  %v997_v28 = vld [vmem:[#allocation3 + $0x50] sm:$0xff]  ;;  %v1000_v37 = vld [vmem:[#allocation3 + $0x68] sm:$0xff]  ;;  %v999_v39 = vld [vmem:[#allocation3 + $0x60] sm:$0xff] }
 0x205   : > { %v1002_v4 = vld [vmem:[#allocation3 + $0x78] sm:$0xff]  ;;  %v1001_v24 = vld [vmem:[#allocation3 + $0x70] sm:$0xff] }
 0x208   : > { %969 = vadd.xlane.f32.xlu1 %v946_v14  ;;  %967 = vadd.xlane.f32.xlu0 %v945_v43 }
 0x20c   : > { %973 = vadd.xlane.f32.xlu1 %v948_v47  ;;  %971 = vadd.xlane.f32.xlu0 %v947_v49 }
 0x210   : > { %977 = vadd.xlane.f32.xlu1 %v950_v50  ;;  %975 = vadd.xlane.f32.xlu0 %v949_v52 }
 0x214   : > { %981 = vadd.xlane.f32.xlu1 %v952_v55  ;;  %979 = vadd.xlane.f32.xlu0 %v951_v56 }
 0x218   : > { %985 = vadd.xlane.f32.xlu1 %v954_v27  ;;  %983 = vadd.xlane.f32.xlu0 %v953_v13 }
 0x21c   : > { %1005 = vadd.xlane.f32.xlu1 %v988_v21  ;;  %1003 = vadd.xlane.f32.xlu0 %v987_v31 }
 0x220   : > { %1009 = vadd.xlane.f32.xlu1 %v990_v59  ;;  %1007 = vadd.xlane.f32.xlu0 %v989_v60 }
 0x224   : > { %1013 = vadd.xlane.f32.xlu1 %v992_v61  ;;  %1011 = vadd.xlane.f32.xlu0 %v991_v29 }
 0x228   : > { %1017 = vadd.xlane.f32.xlu1 %v994_v33  ;;  %1015 = vadd.xlane.f32.xlu0 %v993_v35 }
 0x22c   : > { %1021 = vadd.xlane.f32.xlu1 %v996_v62  ;;  %1019 = vadd.xlane.f32.xlu0 %v995_v63 }
 0x230   : > { %1025 = vadd.xlane.f32.xlu1 %v998_v0  ;;  %1023 = vadd.xlane.f32.xlu0 %v997_v28 }
 0x234   : > { %1029 = vadd.xlane.f32.xlu1 %v1000_v37  ;;  %1027 = vadd.xlane.f32.xlu0 %v999_v39 }
 0x238   : > { %1033 = vadd.xlane.f32.xlu1 %v1002_v4  ;;  %1031 = vadd.xlane.f32.xlu0 %v1001_v24 }
 0x289   : > { %v960_v30 = vpop.xlane.xlu1 %959  ;;  %v956_v34 = vpop.xlane.xlu0 %955 }
 0x28a   : > { %1609 = vlog2.f32 %v956_v34 }
 0x28d   : > { %v962_v36 = vpop.xlane.xlu1 %961  ;;  %v958_v40 = vpop.xlane.xlu0 %957 }
 0x28e   : > { %1611 = vlog2.f32 %v958_v40 }
 0x28f   : > { %1613 = vlog2.f32 %v960_v30 }
 0x290   : > { %1615 = vlog2.f32 %v962_v36 }
 0x291   : > { %v966_v38 = vpop.xlane.xlu1 %965  ;;  %v964_v8 = vpop.xlane.xlu0 %963 }
 0x292   : > { %1617 = vlog2.f32 %v966_v38 }
 0x293   : > { %1619 = vlog2.f32 %v964_v8 }
 0x294   : > { %v1610_v12 = vpop.eup %1609 }
 0x295   : > { %v970_v9 = vpop.xlane.xlu1 %969  ;;  %v968_v45 = vpop.xlane.xlu0 %967  ;;  %v1036_v46 = vmul.f32 0.6931472, %v1610_v12 }
 0x296   : > { %1621 = vlog2.f32 %v970_v9 }
 0x297   : > { %1623 = vlog2.f32 %v968_v45  ;;  %v1067_v5 = vadd.f32 14.285714, %v1036_v46 }
 0x298   : > { %v1612_v15 = vpop.eup %1611 }
 0x299   : > { %v974_v3 = vpop.xlane.xlu1 %973  ;;  %v972_v32 = vpop.xlane.xlu0 %971  ;;  %v1038_v7 = vmul.f32 0.6931472, %v1612_v15 }
 0x29a   : > { %v1614_v57 = vpop.eup %1613  ;;  %1625 = vlog2.f32 %v974_v3 }
 0x29b   : > { %v1616_v48 = vpop.eup %1615  ;;  %1627 = vlog2.f32 %v972_v32  ;;  %v1040_v58 = vmul.f32 0.6931472, %v1614_v57  ;;  %v1068_v44 = vadd.f32 14.285714, %v1038_v7 }
 0x29c   : > { %v1618_v53 = vpop.eup %1617  ;;  %v1042_v54 = vmul.f32 0.6931472, %v1616_v48 }
 0x29d   : > { %v978_v10 = vpop.xlane.xlu1 %977  ;;  %v976_v11 = vpop.xlane.xlu0 %975  ;;  %v1046_v2 = vmul.f32 0.6931472, %v1618_v53  ;;  %v1069_v51 = vadd.f32 14.285714, %v1040_v58 }
 0x29e   : > { %v1620_v20 = vpop.eup %1619  ;;  %1629 = vlog2.f32 %v978_v10  ;;  %v1070_v17 = vadd.f32 14.285714, %v1042_v54 }
 0x29f   : > { %1631 = vlog2.f32 %v976_v11  ;;  %v1044_v18 = vmul.f32 0.6931472, %v1620_v20  ;;  %v1072_v50 = vadd.f32 14.285714, %v1046_v2 }
 0x2a0   : > { %v1622_v1 = vpop.eup %1621 }
 0x2a1   : > { %v982_v16 = vpop.xlane.xlu1 %981  ;;  %v980_v41 = vpop.xlane.xlu0 %979  ;;  %v1071_v55 = vadd.f32 14.285714, %v1044_v18  ;;  %v1050_v56 = vmul.f32 0.6931472, %v1622_v1 }
 0x2a2   : > { %v1624_v26 = vpop.eup %1623  ;;  %1633 = vlog2.f32 %v982_v16 }
 0x2a3   : > { %1635 = vlog2.f32 %v980_v41  ;;  %v1048_v27 = vmul.f32 0.6931472, %v1624_v26  ;;  %v1074_v33 = vadd.f32 14.285714, %v1050_v56 }
 0x2a4   : > { %v1626_v52 = vpop.eup %1625 }
 0x2a5   : > { %v986_v19 = vpop.xlane.xlu1 %985  ;;  %v984_v42 = vpop.xlane.xlu0 %983  ;;  %v1054_v61 = vmul.f32 0.6931472, %v1626_v52  ;;  %v1073_v35 = vadd.f32 14.285714, %v1048_v27 }
 0x2a6   : > { %v1628_v13 = vpop.eup %1627  ;;  %1637 = vlog2.f32 %v986_v19 }
 0x2a7   : > { %1639 = vlog2.f32 %v984_v42  ;;  %v1052_v62 = vmul.f32 0.6931472, %v1628_v13  ;;  %v1076_v4 = vadd.f32 14.285714, %v1054_v61 }
 0x2a8   : > { %v1630_v29 = vpop.eup %1629 }
 0x2a9   : > { %v1006_v22 = vpop.xlane.xlu1 %1005  ;;  %v1004_v6 = vpop.xlane.xlu0 %1003  ;;  %v1075_v30 = vadd.f32 14.285714, %v1052_v62  ;;  %v1058_v34 = vmul.f32 0.6931472, %v1630_v29 }
 0x2aa   : > { %v1084_v23 = vsub.f32 %v1068_v44, %v1006_v22  ;;  %v1083_v25 = vsub.f32 %v1067_v5, %v1004_v6  ;;  %v1632_v63 = vpop.eup %1631 }
 0x2ab   : > { %v1056_v36 = vmul.f32 0.6931472, %v1632_v63  ;;  %v1078_v10 = vadd.f32 14.285714, %v1058_v34 }
 0x2ac   : > { %1101 = vst.msk [vmem:[%s2064_s27 + $0x8] sm:$0xff] %vm1099_vm0, %v1084_v23  ;;  %1100 = vst.msk [vmem:[%s2064_s27] sm:$0xff] %vm1099_vm0, %v1083_v25  ;;  %v1634_v24 = vpop.eup %1633 }
 0x2ad   : > { %v1010_v14 = vpop.xlane.xlu1 %1009  ;;  %v1008_v43 = vpop.xlane.xlu0 %1007  ;;  %v1062_v3 = vmul.f32 0.6931472, %v1634_v24  ;;  %v1077_v11 = vadd.f32 14.285714, %v1056_v36 }
 0x2ae   : > { %v1086_v47 = vsub.f32 %v1070_v17, %v1010_v14  ;;  %v1085_v49 = vsub.f32 %v1069_v51, %v1008_v43  ;;  %v1636_v40 = vpop.eup %1635 }
 0x2af   : > { %v1060_v12 = vmul.f32 0.6931472, %v1636_v40  ;;  %v1080_v46 = vadd.f32 14.285714, %v1062_v3 }
 0x2b0   : > { %1103 = vst.msk [vmem:[%s2064_s27 + $0x18] sm:$0xff] %vm1099_vm0, %v1086_v47  ;;  %1102 = vst.msk [vmem:[%s2064_s27 + $0x10] sm:$0xff] %vm1099_vm0, %v1085_v49  ;;  %v1638_v32 = vpop.eup %1637 }
 0x2b1   : > { %v1014_v21 = vpop.xlane.xlu1 %1013  ;;  %v1012_v31 = vpop.xlane.xlu0 %1011  ;;  %v1079_v48 = vadd.f32 14.285714, %v1060_v12  ;;  %v1066_v19 = vmul.f32 0.6931472, %v1638_v32 }
 0x2b2   : > { %v1088_v59 = vsub.f32 %v1072_v50, %v1014_v21  ;;  %v1087_v60 = vsub.f32 %v1071_v55, %v1012_v31  ;;  %v1640_v15 = vpop.eup %1639 }
 0x2b3   : > { %v1064_v42 = vmul.f32 0.6931472, %v1640_v15  ;;  %v1082_v54 = vadd.f32 14.285714, %v1066_v19 }
 0x2b4   : > { %1105 = vst.msk [vmem:[%s2064_s27 + $0x28] sm:$0xff] %vm1099_vm0, %v1088_v59  ;;  %1104 = vst.msk [vmem:[%s2064_s27 + $0x20] sm:$0xff] %vm1099_vm0, %v1087_v60 }
 0x2b5   : > { %v1018_v0 = vpop.xlane.xlu1 %1017  ;;  %v1016_v28 = vpop.xlane.xlu0 %1015  ;;  %v1081_v20 = vadd.f32 14.285714, %v1064_v42 }
 0x2b6   : > { %v1090_v37 = vsub.f32 %v1074_v33, %v1018_v0  ;;  %v1089_v39 = vsub.f32 %v1073_v35, %v1016_v28 }
 0x2b8   : > { %1107 = vst.msk [vmem:[%s2064_s27 + $0x38] sm:$0xff] %vm1099_vm0, %v1090_v37  ;;  %1106 = vst.msk [vmem:[%s2064_s27 + $0x30] sm:$0xff] %vm1099_vm0, %v1089_v39 }
 0x2b9   : > { %v1022_v38 = vpop.xlane.xlu1 %1021  ;;  %v1020_v8 = vpop.xlane.xlu0 %1019 }
 0x2ba   : > { %v1092_v9 = vsub.f32 %v1076_v4, %v1022_v38  ;;  %v1091_v45 = vsub.f32 %v1075_v30, %v1020_v8 }
 0x2bc   : > { %1109 = vst.msk [vmem:[%s2064_s27 + $0x48] sm:$0xff] %vm1099_vm0, %v1092_v9  ;;  %1108 = vst.msk [vmem:[%s2064_s27 + $0x40] sm:$0xff] %vm1099_vm0, %v1091_v45 }
 0x2bd   : > { %v1026_v16 = vpop.xlane.xlu1 %1025  ;;  %v1024_v41 = vpop.xlane.xlu0 %1023 }
 0x2be   : > { %v1094_v57 = vsub.f32 %v1078_v10, %v1026_v16  ;;  %v1093_v7 = vsub.f32 %v1077_v11, %v1024_v41 }
 0x2c0   : > { %1111 = vst.msk [vmem:[%s2064_s27 + $0x58] sm:$0xff] %vm1099_vm0, %v1094_v57  ;;  %1110 = vst.msk [vmem:[%s2064_s27 + $0x50] sm:$0xff] %vm1099_vm0, %v1093_v7 }
 0x2c1   : > { %v1030_v58 = vpop.xlane.xlu1 %1029  ;;  %v1028_v53 = vpop.xlane.xlu0 %1027 }
 0x2c2   : > { %v1096_v44 = vsub.f32 %v1080_v46, %v1030_v58  ;;  %v1095_v5 = vsub.f32 %v1079_v48, %v1028_v53 }
 0x2c4   : > { %1113 = vst.msk [vmem:[%s2064_s27 + $0x68] sm:$0xff] %vm1099_vm0, %v1096_v44  ;;  %1112 = vst.msk [vmem:[%s2064_s27 + $0x60] sm:$0xff] %vm1099_vm0, %v1095_v5 }
 0x2c5   : > { %v1034_v22 = vpop.xlane.xlu1 %1033  ;;  %v1032_v6 = vpop.xlane.xlu0 %1031 }
 0x2c6   : > { %v1098_v23 = vsub.f32 %v1082_v54, %v1034_v22  ;;  %v1097_v25 = vsub.f32 %v1081_v20, %v1032_v6 }
 0x2c8   : > { %1115 = vst.msk [vmem:[%s2064_s27 + $0x78] sm:$0xff] %vm1099_vm0, %v1098_v23  ;;  %1114 = vst.msk [vmem:[%s2064_s27 + $0x70] sm:$0xff] %vm1099_vm0, %v1097_v25 }
 0x2c9 PF: > { %s1321_s5 = sshll.u32 %s1813_s19, 5  ;;  %s1137_s26 = sshll.u32 %s2066_s24, 4  ;;  %s2447_s26 = int_to_ptr.vmem [resolvable:$true] %s1137_s26 }
 0x2ca   : > { %s1134_s15 = sadd.s32 %s1809_s18, %s1321_s5  ;;  %s2456_s27 = scalar_lea.sflag [#allocation6], %s216_s29 }
 0x2cb   : > { %s1317_s23 = sshll.u32 %s1134_s15, 7  ;;  %s1699_s20 = scalar_lea.vmem %s2447_s26, 2048 }
 0x2cc   : > { %s2452_s9 = scalar_lea.hbm %s2519_s2, %s1317_s23  ;;  %p1700_p7 = scmp.ne.s32.totalorder %s2447_s26, %s1699_s20 }
 0x2cd   : > { %p2556_p9 = scmp.ne.s32.totalorder %s2538_s28, 0  ;;  %s1832_s18 = smov [#allocation9]  }
 0x2ce   : > { %s1703_s19 = sshll.u32 %s1832_s18, 4  ;;  %s1704_s19 = int_to_ptr.vmem [resolvable:$false] %s1703_s19 }
 0x2cf   : > { %p1701_p11 = pnand %p1700_p7, %p2556_p9  ;;  %s1705_s24 = scalar_lea.vmem %s1704_s19, 4096 }
 0x2d0   : > { %p1706_p0 = scmp.lt.s32.totalorder %s2447_s26, %s1704_s19  ;;  %p1707_p2 = scmp.lt.s32.totalorder %s1705_s24, %s1699_s20 }
 0x2d1   : > { %p1702_p13 = pneg %p1701_p11 }
 0x2d2   : > { %p1708_p5 = por %p1707_p2, %p1706_p0 }
 0x2d4   : > { %p1709_p8 = pnand %p1708_p5, %p1702_p13 }
 0x2d6   : > { %1712 = shalt.err (!%p1709_p8)
}
 0x2d7   : > { %s1713_s29 = scalar_lea.hbm %s2452_s9, 2048  ;;  %s1717_s10 = scalar_lea.hbm %s2519_s2, 8192 }
 0x2d8   : > { %p1714_p12 = scmp.ne.s32.totalorder %s2452_s9, %s1713_s29  ;;  %p1718_p10 = scmp.lt.u32.totalorder %s2452_s9, %s2519_s2 }
 0x2d9   : > { %p1719_p3 = scmp.lt.u32.totalorder %s1717_s10, %s1713_s29  ;;  %p1721_p7 = scmp.lt.u32.totalorder %s1713_s29, %s2452_s9 }
 0x2da   : > { %p1715_p1 = pnand %p1714_p12, %p2556_p9 }
 0x2db   : > { %p1720_p4 = por %p1719_p3, %p1718_p10 }
 0x2dc   : > { %p1716_p6 = pneg %p1715_p1 }
 0x2dd   : > { %p1722_p11 = por %p1721_p7, %p1720_p4 }
 0x2df   : > { %p1723_p13 = pnand %p1722_p11, %p1716_p6 }
 0x2e1   : > { %1726 = shalt.err (!%p1723_p13)
}
 0x2e2   : > { %s1833_s11 = smov 128   ;;  %s1834_s5 = smov 256  }
 0x2e3   : > { %s1835_s15 = smov 8  }
 0x2e4   : > { %1464 = dma.vmem_to_hbm [thread:$0]  (%p2556_p9), %s2447_s26, 2048, %s2452_s9, %s2456_s27, %s1833_s11, %s1834_s5, %s1835_s15  }
 0x2e5 PF: > { %s2557_s23 = sld [smem:[#allocation13_spill]]  ;;  %s2558_s25 = sld [smem:[#allocation15_spill]] }
 0x2e6   : > { %p1481_p0 = scmp.ge.s32.totalorder %s1825_s22, 2 }
 0x2eb   : > { %s1156_s8 = sand.u32 1, %s2557_s23   ;;  %p2559_p2 = scmp.ne.s32.totalorder %s2558_s25, 0 }
 0x2ec   : > { %s1157_s20 = scalar_lea.sflag [#allocation6], %s1156_s8 }
 0x2ed   : > { %p1475_p5 = pnand %p1481_p0, %p2559_p2 }
 0x2ef   : > { %1780 = dma.done.wait (!%p1475_p5), %s1157_s20, 2048  }
 0x2f0   : > { %1782 = vsyncadd (!%p1475_p5), %s1157_s20, 4294965248  ;;  %s21_s22 = sadd.s32 1, %s1825_s22   ;;  %s2560_s18 = sld [smem:[#allocation14_spill]] }
 0x2f1   : > { %p18_p8 = scmp.ge.s32.totalorder %s21_s22, 6   ;;  %s2561_s20 = sld [smem:[#allocation16_spill]] }
 0x2f2   : > { %s2562_s28 = sld [smem:[#allocation17_spill]]  ;;  %s2563_s12 = smov %s1789_s13 }
 0x2f3   : > { %s2564_s13 = smov %s1793_s14  ;;  %s2565_s14 = smov %s1996_s1 }
 0x2f4   : > { %s2566_s15 = smov %s1801_s16  ;;  %s2567_s16 = smov %s1805_s17 }
 0x2f5   : > { %s2568_s17 = smov %s1991_s7  ;;  %s2569_s19 = smov %s1821_s21 }
 0x2f6   :  { %20 = sbr.rel (!%p18_p8) target bundleno = 12 (0xc), region = 110 }
 0x2f8   : > { %s2570_s21 = smov %s2562_s28 }
 0x2fd   :  { %1170 = vsyncpa [#allocation5], 1 }
 0x2fe   :  { %1172 = vsyncpa [#allocation5 + $0x1], 1 }
 0x2ff   :  { %1173 = vsyncpa [#allocation8], 1 }
 0x300   :  { %1174 = vsyncpa [#allocation6], 1 }
 0x301   :  { %1176 = vsyncpa [#allocation6 + $0x1], 1 }

</bundles_post_ra>
